<compile_context>
chip_gen: v7x
topology: tpu7x:2x2x1
jax: 0.10.0
libtpu: 0.0.40
codegen_flags: <defaults>
</compile_context>

<pallas_src>
import jax
import jax.numpy as jnp
from jax.experimental import pallas as pl
from jax.experimental.pallas import tpu as pltpu

# Deterministic RBF hyperparameters (synthetic "trained" GP).
LENGTHSCALE = 6.0
OUTPUTSCALE = 2.0
NOISE = 0.1


def _gp_predict_kernel(xt_ref, xtr_ref, alpha_ref, kinv_ref, out_ref,
                       kstar_sc, vacc_sc, mean_sc, var_sc):
    j = pl.program_id(0)            # kinv column block
    k = pl.program_id(1)            # kinv row block (reduction axis, innermost)
    nj = pl.num_programs(0)
    nk = pl.num_programs(1)
    tk, tn = kinv_ref.shape

    # ---- one-time setup: full K_*X slab, predictive mean, var init --------
    @pl.when((j == 0) & (k == 0))
    def _():
        inv_ls = 1.0 / LENGTHSCALE
        xt = xt_ref[...] * inv_ls           # fold lengthscale into the inputs
        xtr = xtr_ref[...] * inv_ls
        cross = jnp.dot(xt, xtr.T, preferred_element_type=jnp.float32)   # MXU
        sq_t = jnp.sum(xt * xt, axis=-1, keepdims=True)                  # (M,1)
        sq_tr = jnp.sum(xtr * xtr, axis=-1, keepdims=True).T             # (1,N)
        d2 = jnp.maximum(sq_t + sq_tr - 2.0 * cross, 0.0)
        kstar = OUTPUTSCALE * jnp.exp(-0.5 * d2)                         # EUP
        kstar_sc[...] = kstar
        # Predictive mean: VPU multiply + lane reduce against alpha (1, N)
        # (replaces the lane-width-1 (M,N)@(N,1) MXU matvec).
        mean_sc[...] = jnp.sum(kstar * alpha_ref[...], axis=-1, keepdims=True)
        var_sc[...] = jnp.full_like(var_sc, OUTPUTSCALE)

    # ---- start of each column block: reset the (M, TN) accumulator --------
    @pl.when(k == 0)
    def _():
        vacc_sc[...] = jnp.zeros_like(vacc_sc)

    # ---- stream kinv tile: vacc += K_*X[:, kblk] @ Kinv[kblk, jblk] --------
    koff = pl.multiple_of(k * tk, tk)
    vacc_sc[...] += jnp.dot(kstar_sc[:, pl.ds(koff, tk)], kinv_ref[...],
                            preferred_element_type=jnp.float32)

    # ---- end of the reduction for this column block: fold into variance ---
    @pl.when(k == nk - 1)
    def _():
        joff = pl.multiple_of(j * tn, tn)
        var_sc[...] -= jnp.sum(vacc_sc[...] * kstar_sc[:, pl.ds(joff, tn)],
                               axis=-1, keepdims=True)

    # ---- final grid step: emit one lane-oriented (2, M) output slab --------
    @pl.when((j == nj - 1) & (k == nk - 1))
    def _():
        # TODO(synk): add NOISE here if the wrapped GP applies its Gaussian
        # likelihood; the module as written calls gp(input_) directly, so the
        # latent (noise-free) variance below matches its semantics.
        out_ref[0:1, :] = mean_sc[...].T                            # (1, M)
        out_ref[1:2, :] = jnp.maximum(var_sc[...], 0.0).T           # (1, M)


def gp_mean_var(x_test, x_train, alpha, kinv, *, tile=256):
    """Pallas-backed (mean, variance) — MeanVarModelWrapper.forward."""
    M, D = x_test.shape
    N, _ = x_train.shape
    assert kinv.shape == (N, N)

    # Pad test points to a sublane multiple of 8.
    m_pad = max(8, ((M + 7) // 8) * 8)
    if m_pad != M:
        x_test = jnp.pad(x_test, ((0, m_pad - M), (0, 0)))

    # kinv tile size: largest preferred size dividing N (full array fallback).
    t = tile
    if t > N or N % t != 0:
        t = next((c for c in (512, 256, 128) if c <= N and N % c == 0), N)
    tk = tn = t
    nj, nk = N // tn, N // tk

    alpha_row = jnp.asarray(alpha, jnp.float32).reshape(1, N)  # lane-dense alpha

    # Explicit scoped-VMEM budget: streamed kinv tile (x2 buffers) + resident
    # slabs, with headroom; capped at 48 MiB so v7x (64 MiB VMEM) never OOMs.
    need = (2 * tk * tn * 4          # kinv tile, double-buffered
            + m_pad * N * 4          # K_*X slab
            + m_pad * tn * 4         # quadratic-form accumulator
            + N * D * 4 + m_pad * D * 4 + N * 4 + 8 * m_pad * 4)
    vmem_limit = int(min(max(4 * need, 16 * 1024 * 1024), 48 * 1024 * 1024))

    out = pl.pallas_call(
        _gp_predict_kernel,
        out_shape=jax.ShapeDtypeStruct((2, m_pad), jnp.float32),
        grid_spec=pltpu.PrefetchScalarGridSpec(
            num_scalar_prefetch=0,
            grid=(nj, nk),
            in_specs=[
                pl.BlockSpec((m_pad, D), lambda j, k: (0, 0)),   # x_test  (resident)
                pl.BlockSpec((N, D), lambda j, k: (0, 0)),       # x_train (resident)
                pl.BlockSpec((1, N), lambda j, k: (0, 0)),       # alpha   (resident)
                # Streamed + double-buffered kinv tile.  Next knob if the DMA
                # is still exposed: pipeline_mode=pl.Buffered(3).
                pl.BlockSpec((tk, tn), lambda j, k: (k, j)),
            ],
            out_specs=pl.BlockSpec((2, m_pad), lambda j, k: (0, 0)),
            scratch_shapes=[
                pltpu.VMEM((m_pad, N), jnp.float32),    # K_*X slab
                pltpu.VMEM((m_pad, tn), jnp.float32),   # per-column-block acc
                pltpu.VMEM((m_pad, 1), jnp.float32),    # mean
                pltpu.VMEM((m_pad, 1), jnp.float32),    # variance
            ],
        ),
        # Both axes feed resident accumulators -> "arbitrary".  (A megacore
        # split of the column blocks with per-core partials is a future knob.)
        compiler_params=pltpu.CompilerParams(
            dimension_semantics=("arbitrary", "arbitrary"),
            vmem_limit_bytes=vmem_limit,
        ),
    )(x_test, x_train, alpha_row, kinv)

    return out[0, :M], out[1, :M]


def _rbf(a, b):
    a = a / LENGTHSCALE
    b = b / LENGTHSCALE
    d2 = (jnp.sum(a * a, -1, keepdims=True)
          + jnp.sum(b * b, -1, keepdims=True).T
          - 2.0 * a @ b.T)
    return OUTPUTSCALE * jnp.exp(-0.5 * jnp.maximum(d2, 0.0))


if __name__ == "__main__":
    key = jax.random.PRNGKey(0)
    k1, k2, k3 = jax.random.split(key, 3)

    M, N, D = 8, 512, 32   # test points, train points, feature dim

    x_train = jax.random.normal(k1, (N, D), dtype=jnp.float32)
    y_train = jax.random.normal(k2, (N,), dtype=jnp.float32)
    x_test = jax.random.normal(k3, (M, D), dtype=jnp.float32)

    # Deterministic "fitted" exact-GP state (setup / glue in plain JAX).
    k_xx = _rbf(x_train, x_train) + NOISE * jnp.eye(N, dtype=jnp.float32)
    kinv = jnp.linalg.inv(k_xx).astype(jnp.float32)
    alpha = (kinv @ y_train[:, None]).astype(jnp.float32)

    mean, var = gp_mean_var(x_test, x_train, alpha, kinv, tile=256)  # grid (2, 2)
    jax.block_until_ready((mean, var))

    # Pure-JAX reference of the same (latent) posterior.
    k_star = _rbf(x_test, x_train)
    mean_ref = (k_star @ alpha)[:, 0]
    var_ref = jnp.maximum(
        OUTPUTSCALE - jnp.sum((k_star @ kinv) * k_star, axis=-1), 0.0)

    assert jnp.allclose(mean, mean_ref, atol=2e-3, rtol=2e-3)
    assert jnp.allclose(var, var_ref, atol=2e-3, rtol=2e-3)

    print("KERNEL_OK")
</pallas_src>

<mosaic_0001>
module attributes {stable_mosaic.version = 11 : i64} {
  func.func @_gp_predict_kernel(%arg0: i32, %arg1: i32, %arg2: memref<8x32xf32, #tpu.memory_space<vmem>>, %arg3: memref<512x32xf32, #tpu.memory_space<vmem>>, %arg4: memref<1x512xf32, #tpu.memory_space<vmem>>, %arg5: memref<256x256xf32, #tpu.memory_space<vmem>>, %arg6: memref<2x8xf32, #tpu.memory_space<vmem>>, %arg7: memref<8x512xf32, #tpu.memory_space<vmem>>, %arg8: memref<8x256xf32, #tpu.memory_space<vmem>>, %arg9: memref<8x1xf32, #tpu.memory_space<vmem>>, %arg10: memref<8x1xf32, #tpu.memory_space<vmem>>) attributes {dimension_semantics = [#tpu.dimension_semantics<arbitrary>, #tpu.dimension_semantics<arbitrary>], iteration_bounds = array<i64: 2, 2>, scalar_prefetch = 0 : i64, scratch_operands = 4 : i64, tpu.core_type = #tpu.core_type<tc>, window_params = [{pipeline_mode = #tpu.pipeline_mode<synchronous>, transform_indices = @transform_0, window_bounds = array<i64: 8, 32>}, {pipeline_mode = #tpu.pipeline_mode<synchronous>, transform_indices = @transform_1, window_bounds = array<i64: 512, 32>}, {pipeline_mode = #tpu.pipeline_mode<synchronous>, transform_indices = @transform_2, window_bounds = array<i64: 1, 512>}, {transform_indices = @transform_3, window_bounds = array<i64: 256, 256>}, {pipeline_mode = #tpu.pipeline_mode<synchronous>, transform_indices = @transform_4, window_bounds = array<i64: 2, 8>}]} {
    %c0_i32 = arith.constant 0 : i32
    %0 = arith.cmpi eq, %arg0, %c0_i32 : i32
    %c0_i32_0 = arith.constant 0 : i32
    %1 = arith.cmpi eq, %arg1, %c0_i32_0 : i32
    %2 = arith.andi %0, %1 : i1
    %3 = arith.extui %2 : i1 to i32
    %c0_i32_1 = arith.constant 0 : i32
    %4 = arith.cmpi ne, %3, %c0_i32_1 : i32
    scf.if %4 {
      %c0_14 = arith.constant 0 : index
      %c0_15 = arith.constant 0 : index
      %25 = vector.load %arg2[%c0_14, %c0_15] : memref<8x32xf32, #tpu.memory_space<vmem>>, vector<8x32xf32>
      %cst_16 = arith.constant 0.166666672 : f32
      %26 = vector.broadcast %cst_16 : f32 to vector<8x32xf32>
      %27 = arith.mulf %25, %26 : vector<8x32xf32>
      %c0_17 = arith.constant 0 : index
      %c0_18 = arith.constant 0 : index
      %28 = vector.load %arg3[%c0_17, %c0_18] : memref<512x32xf32, #tpu.memory_space<vmem>>, vector<512x32xf32>
      %cst_19 = arith.constant 0.166666672 : f32
      %29 = vector.broadcast %cst_19 : f32 to vector<512x32xf32>
      %30 = arith.mulf %28, %29 : vector<512x32xf32>
      %31 = tpu.transpose %30, [1, 0] : vector<512x32xf32> -> vector<32x512xf32>
      %cst_20 = arith.constant dense<0.000000e+00> : vector<8x512xf32>
      %32 = tpu.matmul %27, %31, %cst_20 {dimension_numbers = #tpu.dot_dimension_numbers<[1], [0], [0], [1], [0, 0, 1, 1], [], []>} : vector<8x32xf32>, vector<32x512xf32>, vector<8x512xf32> -> vector<8x512xf32>
      %33 = arith.mulf %27, %27 : vector<8x32xf32>
      %cst_21 = arith.constant dense<0.000000e+00> : vector<8xf32>
      %34 = vector.multi_reduction <add>, %33, %cst_21 [1] : vector<8x32xf32> to vector<8xf32>
      %35 = vector.shape_cast %34 : vector<8xf32> to vector<8x1xf32>
      %36 = arith.mulf %30, %30 : vector<512x32xf32>
      %cst_22 = arith.constant dense<0.000000e+00> : vector<512xf32>
      %37 = vector.multi_reduction <add>, %36, %cst_22 [1] : vector<512x32xf32> to vector<512xf32>
      %38 = vector.shape_cast %37 : vector<512xf32> to vector<512x1xf32>
      %39 = tpu.transpose %38, [1, 0] : vector<512x1xf32> -> vector<1x512xf32>
      %40 = vector.broadcast %35 : vector<8x1xf32> to vector<8x512xf32>
      %41 = vector.broadcast %39 : vector<1x512xf32> to vector<8x512xf32>
      %42 = arith.addf %40, %41 : vector<8x512xf32>
      %cst_23 = arith.constant 2.000000e+00 : f32
      %43 = vector.broadcast %cst_23 : f32 to vector<8x512xf32>
      %44 = arith.mulf %43, %32 : vector<8x512xf32>
      %45 = arith.subf %42, %44 : vector<8x512xf32>
      %cst_24 = arith.constant 0.000000e+00 : f32
      %46 = vector.broadcast %cst_24 : f32 to vector<8x512xf32>
      %47 = arith.maximumf %45, %46 : vector<8x512xf32>
      %cst_25 = arith.constant -5.000000e-01 : f32
      %48 = vector.broadcast %cst_25 : f32 to vector<8x512xf32>
      %49 = arith.mulf %48, %47 : vector<8x512xf32>
      %50 = math.exp %49 : vector<8x512xf32>
      %cst_26 = arith.constant 2.000000e+00 : f32
      %51 = vector.broadcast %cst_26 : f32 to vector<8x512xf32>
      %52 = arith.mulf %51, %50 : vector<8x512xf32>
      %c0_27 = arith.constant 0 : index
      %c0_28 = arith.constant 0 : index
      %53 = vector.load %arg7[%c0_27, %c0_28] : memref<8x512xf32, #tpu.memory_space<vmem>>, vector<8x512xf32>
      tpu.vector_store %arg7[%c0_27, %c0_28], %52 {strides = array<i32>} : memref<8x512xf32, #tpu.memory_space<vmem>>, vector<8x512xf32>,
      %c0_29 = arith.constant 0 : index
      %c0_30 = arith.constant 0 : index
      %54 = vector.load %arg4[%c0_29, %c0_30] : memref<1x512xf32, #tpu.memory_space<vmem>>, vector<1x512xf32>
      %55 = vector.broadcast %54 : vector<1x512xf32> to vector<8x512xf32>
      %56 = arith.mulf %52, %55 : vector<8x512xf32>
      %cst_31 = arith.constant dense<0.000000e+00> : vector<8xf32>
      %57 = vector.multi_reduction <add>, %56, %cst_31 [1] : vector<8x512xf32> to vector<8xf32>
      %58 = vector.shape_cast %57 : vector<8xf32> to vector<8x1xf32>
      %c0_32 = arith.constant 0 : index
      %c0_33 = arith.constant 0 : index
      %59 = vector.load %arg9[%c0_32, %c0_33] : memref<8x1xf32, #tpu.memory_space<vmem>>, vector<8x1xf32>
      tpu.vector_store %arg9[%c0_32, %c0_33], %58 {strides = array<i32>} : memref<8x1xf32, #tpu.memory_space<vmem>>, vector<8x1xf32>,
      %cst_34 = arith.constant 2.000000e+00 : f32
      %60 = vector.broadcast %cst_34 : f32 to vector<8x1xf32>
      %c0_35 = arith.constant 0 : index
      %c0_36 = arith.constant 0 : index
      %61 = vector.load %arg10[%c0_35, %c0_36] : memref<8x1xf32, #tpu.memory_space<vmem>>, vector<8x1xf32>
      tpu.vector_store %arg10[%c0_35, %c0_36], %60 {strides = array<i32>} : memref<8x1xf32, #tpu.memory_space<vmem>>, vector<8x1xf32>,
    } else {
    }
    %c0_i32_2 = arith.constant 0 : i32
    %5 = arith.cmpi eq, %arg1, %c0_i32_2 : i32
    %6 = arith.extui %5 : i1 to i32
    %c0_i32_3 = arith.constant 0 : i32
    %7 = arith.cmpi ne, %6, %c0_i32_3 : i32
    scf.if %7 {
      %cst_14 = arith.constant 0.000000e+00 : f32
      %25 = vector.broadcast %cst_14 : f32 to vector<8x256xf32>
      %c0_15 = arith.constant 0 : index
      %c0_16 = arith.constant 0 : index
      %26 = vector.load %arg8[%c0_15, %c0_16] : memref<8x256xf32, #tpu.memory_space<vmem>>, vector<8x256xf32>
      tpu.vector_store %arg8[%c0_15, %c0_16], %25 {strides = array<i32>} : memref<8x256xf32, #tpu.memory_space<vmem>>, vector<8x256xf32>,
    } else {
    }
    %c256_i32 = arith.constant 256 : i32
    %8 = arith.muli %arg1, %c256_i32 : i32
    %9 = tpu.assume_multiple %8, 256 : i32
    %c0 = arith.constant 0 : index
    %c0_4 = arith.constant 0 : index
    %10 = vector.load %arg8[%c0, %c0_4] : memref<8x256xf32, #tpu.memory_space<vmem>>, vector<8x256xf32>
    %c0_5 = arith.constant 0 : index
    %11 = arith.index_cast %9 : i32 to index
    %12 = vector.load %arg7[%c0_5, %11] : memref<8x512xf32, #tpu.memory_space<vmem>>, vector<8x256xf32>
    %c0_6 = arith.constant 0 : index
    %c0_7 = arith.constant 0 : index
    %13 = vector.load %arg5[%c0_6, %c0_7] : memref<256x256xf32, #tpu.memory_space<vmem>>, vector<256x256xf32>
    %cst = arith.constant dense<0.000000e+00> : vector<8x256xf32>
    %14 = tpu.matmul %12, %13, %cst {dimension_numbers = #tpu.dot_dimension_numbers<[1], [0], [0], [1], [0, 0, 1, 1], [], []>} : vector<8x256xf32>, vector<256x256xf32>, vector<8x256xf32> -> vector<8x256xf32>
    %15 = arith.addf %10, %14 : vector<8x256xf32>
    %c0_8 = arith.constant 0 : index
    %c0_9 = arith.constant 0 : index
    %16 = vector.load %arg8[%c0_8, %c0_9] : memref<8x256xf32, #tpu.memory_space<vmem>>, vector<8x256xf32>
    tpu.vector_store %arg8[%c0_8, %c0_9], %15 {strides = array<i32>} : memref<8x256xf32, #tpu.memory_space<vmem>>, vector<8x256xf32>,
    %c1_i32 = arith.constant 1 : i32
    %17 = arith.cmpi eq, %arg1, %c1_i32 : i32
    %18 = arith.extui %17 : i1 to i32
    %c0_i32_10 = arith.constant 0 : i32
    %19 = arith.cmpi ne, %18, %c0_i32_10 : i32
    scf.if %19 {
      %c256_i32_14 = arith.constant 256 : i32
      %25 = arith.muli %arg0, %c256_i32_14 : i32
      %26 = tpu.assume_multiple %25, 256 : i32
      %c0_15 = arith.constant 0 : index
      %c0_16 = arith.constant 0 : index
      %27 = vector.load %arg10[%c0_15, %c0_16] : memref<8x1xf32, #tpu.memory_space<vmem>>, vector<8x1xf32>
      %c0_17 = arith.constant 0 : index
      %c0_18 = arith.constant 0 : index
      %28 = vector.load %arg8[%c0_17, %c0_18] : memref<8x256xf32, #tpu.memory_space<vmem>>, vector<8x256xf32>
      %c0_19 = arith.constant 0 : index
      %29 = arith.index_cast %26 : i32 to index
      %30 = vector.load %arg7[%c0_19, %29] : memref<8x512xf32, #tpu.memory_space<vmem>>, vector<8x256xf32>
      %31 = arith.mulf %28, %30 : vector<8x256xf32>
      %cst_20 = arith.constant dense<0.000000e+00> : vector<8xf32>
      %32 = vector.multi_reduction <add>, %31, %cst_20 [1] : vector<8x256xf32> to vector<8xf32>
      %33 = vector.shape_cast %32 : vector<8xf32> to vector<8x1xf32>
      %34 = arith.subf %27, %33 : vector<8x1xf32>
      %c0_21 = arith.constant 0 : index
      %c0_22 = arith.constant 0 : index
      %35 = vector.load %arg10[%c0_21, %c0_22] : memref<8x1xf32, #tpu.memory_space<vmem>>, vector<8x1xf32>
      tpu.vector_store %arg10[%c0_21, %c0_22], %34 {strides = array<i32>} : memref<8x1xf32, #tpu.memory_space<vmem>>, vector<8x1xf32>,
    } else {
    }
    %c1_i32_11 = arith.constant 1 : i32
    %20 = arith.cmpi eq, %arg0, %c1_i32_11 : i32
    %c1_i32_12 = arith.constant 1 : i32
    %21 = arith.cmpi eq, %arg1, %c1_i32_12 : i32
    %22 = arith.andi %20, %21 : i1
    %23 = arith.extui %22 : i1 to i32
    %c0_i32_13 = arith.constant 0 : i32
    %24 = arith.cmpi ne, %23, %c0_i32_13 : i32
    scf.if %24 {
      %c0_14 = arith.constant 0 : index
      %c0_15 = arith.constant 0 : index
      %25 = vector.load %arg9[%c0_14, %c0_15] : memref<8x1xf32, #tpu.memory_space<vmem>>, vector<8x1xf32>
      %26 = tpu.transpose %25, [1, 0] : vector<8x1xf32> -> vector<1x8xf32>
      %c0_16 = arith.constant 0 : index
      %c0_17 = arith.constant 0 : index
      %27 = vector.load %arg6[%c0_16, %c0_17] : memref<2x8xf32, #tpu.memory_space<vmem>>, vector<1x8xf32>
      tpu.vector_store %arg6[%c0_16, %c0_17], %26 {strides = array<i32>} : memref<2x8xf32, #tpu.memory_space<vmem>>, vector<1x8xf32>,
      %c0_18 = arith.constant 0 : index
      %c0_19 = arith.constant 0 : index
      %28 = vector.load %arg10[%c0_18, %c0_19] : memref<8x1xf32, #tpu.memory_space<vmem>>, vector<8x1xf32>
      %cst_20 = arith.constant 0.000000e+00 : f32
      %29 = vector.broadcast %cst_20 : f32 to vector<8x1xf32>
      %30 = arith.maximumf %28, %29 : vector<8x1xf32>
      %31 = tpu.transpose %30, [1, 0] : vector<8x1xf32> -> vector<1x8xf32>
      %c1 = arith.constant 1 : index
      %c0_21 = arith.constant 0 : index
      %32 = vector.load %arg6[%c1, %c0_21] : memref<2x8xf32, #tpu.memory_space<vmem>>, vector<1x8xf32>
      tpu.vector_store %arg6[%c1, %c0_21], %31 {strides = array<i32>} : memref<2x8xf32, #tpu.memory_space<vmem>>, vector<1x8xf32>,
    } else {
    }
    return
  }
  func.func @transform_0(%arg0: i32, %arg1: i32) -> (i32, i32) {
    %c0_i32 = arith.constant 0 : i32
    %c0_i32_0 = arith.constant 0 : i32
    %c0_i32_1 = arith.constant 0 : i32
    return %c0_i32, %c0_i32_0 : i32, i32
  }
  func.func @transform_1(%arg0: i32, %arg1: i32) -> (i32, i32) {
    %c0_i32 = arith.constant 0 : i32
    %c0_i32_0 = arith.constant 0 : i32
    %c0_i32_1 = arith.constant 0 : i32
    return %c0_i32, %c0_i32_0 : i32, i32
  }
  func.func @transform_2(%arg0: i32, %arg1: i32) -> (i32, i32) {
    %c0_i32 = arith.constant 0 : i32
    %c0_i32_0 = arith.constant 0 : i32
    %c0_i32_1 = arith.constant 0 : i32
    return %c0_i32, %c0_i32_0 : i32, i32
  }
  func.func @transform_3(%arg0: i32, %arg1: i32) -> (i32, i32) {
    %c0_i32 = arith.constant 0 : i32
    return %arg1, %arg0 : i32, i32
  }
  func.func @transform_4(%arg0: i32, %arg1: i32) -> (i32, i32) {
    %c0_i32 = arith.constant 0 : i32
    %c0_i32_0 = arith.constant 0 : i32
    %c0_i32_1 = arith.constant 0 : i32
    return %c0_i32, %c0_i32_0 : i32, i32
  }
}

</mosaic_0001>

<bundles_post_ra>
// kernel: tpu_custom_call.1
= control target key start
LH: loop header
LB: loop body
LE: loop exit
PB: predicated region body
PF: predicated region fallthrough
CT: control target
= control target key end

     0   :  { %9 = vsyncpa [#allocation7], 0  ;;  %s2882_s0 = inlined_call_operand.vmem [shape: f32[8,32], index: 0, kind: input, shape index: {}]   ;;  %s2883_s1 = inlined_call_operand.vmem [shape: f32[512,32], index: 1, kind: input, shape index: {}]   ;;  %s2884_s2 = inlined_call_operand.vmem [shape: f32[1,512], index: 2, kind: input, shape index: {}]   ;;  %s2885_s3 = inlined_call_operand.hbm [shape: f32[512,512], index: 3, kind: input, shape index: {}]   ;;  %s2886_s4 = inlined_call_operand.hbm [shape: f32[2,8], index: 4, kind: output, shape index: {}]  }
   0x1   :  { %11 = vsyncpa [#allocation7 + $0x1], 0 }
   0x2   :  { %12 = vsyncpa [#allocation8], 0  ;;  %s2064_s15 = smov 0   ;;  %s2066_s16 = smov 0  }
   0x3   :  { %s2068_s17 = smov 0   ;;  %s2070_s18 = smov 0  }
   0x4   :  { %s2072_s19 = smov 0   ;;  %s2074_s20 = smov 0  }
   0x5   :  { %s2076_s21 = smov 0   ;;  %s2078_s22 = smov 0  }
   0x6 LB: > { %s2887_s23 = sadd.s32 4294967295, %s2030_s22   ;;  %s27_s24 = sadd.s32 1, %s2022_s20  ;;  %s2030_s22 = sphi %s2078_s22, %s18_s22   ;;  %s2026_s21 = sphi %s2076_s21, %s2904_s21   ;;  %s2022_s20 = sphi %s2074_s20, %s2903_s20   ;;  %s2018_s19 = sphi %s2072_s19, %s2902_s19   ;;  %s2014_s18 = sphi %s2070_s18, %s2901_s18   ;;  %s2010_s17 = sphi %s2068_s17, %s2900_s17   ;;  %s2006_s16 = sphi %s2066_s16, %s2899_s16   ;;  %s2002_s15 = sphi %s2064_s15, %s2898_s15  }
   0x7   : > { %p28_p0 = scmp.ge.s32.totalorder %s27_s24, 2  ;;  %s30_s25 = sadd.s32 1, %s2026_s21 }
   0x8   : > { %s102_s26 = sadd.s32 1, %s2010_s17  ;;  %p109_p1 = scmp.ne.s32.totalorder %s2010_s17, %s2006_s16 }
   0x9   : > { %s2906_s24 = smov (%p28_p0, %s27_s24), 0  ;;  %s2908_s25 = smov (!%p28_p0, %s30_s25), %s2026_s21 }
   0xa   : > { %2889 = sst [smem:[#allocation12_spill]] %s2906_s24  ;;  %s97_s27 = ssub.s32 %s2022_s20, %s2906_s24 }
   0xb   : > { %p110_p2 = scmp.eq.s32.totalorder %s2030_s22, 0  ;;  %p32_p3 = scmp.ge.s32.totalorder %s2908_s25, 2 }
   0xc   : > { %p115_p4 = scmp.ne.s32.totalorder %s2006_s16, %s2002_s15  ;;  %p116_p6 = scmp.eq.s32.totalorder %s2887_s23, 0 }
   0xd   : > { %p2115_p5 = por %p110_p2, %p109_p1  ;;  %s2910_s25 = smov (%p32_p3, %s2908_s25), 0 }
   0xe   : > { %p2123_p7 = por %p116_p6, %p115_p4  ;;  %s98_s30 = ssub.s32 %s2026_s21, %s2910_s25 }
   0xf   : > { %p1822_p8 = scmp.lt.s32.totalorder %s2030_s22, 4  ;;  %s99_s5 = sor.u32 %s98_s30, %s97_s27 }
  0x10   : > { %s169_s6 = sand.u32 1, %s2010_s17   ;;  %p100_p9 = scmp.eq.s32.totalorder %s99_s5, 0 }
  0x11   : > { %s1500_s7 = sshll.u32 %s169_s6, 9  ;;  %s1502_s8 = sshll.u32 %s2026_s21, 1 }
  0x12   : > { %s2133_s9 = scalar_select %p100_p9, %s2010_s17, %s102_s26  }
  0x13   : > { %s1583_s10 = sshll.u32 %s2022_s20, 7  ;;  %s173_s12 = scalar_lea.vmem [#allocation6], %s1500_s7 }
  0x14   : > { %s180_s11 = sadd.s32 %s1583_s10, %s1502_s8  ;;  %s183_s13 = sshll.u32 %s173_s12, 4  ;;  %s2136_s13 = int_to_ptr.vmem [resolvable:$true] %s183_s13 }
  0x15   : > { %s1504_s14 = sshll.u32 %s180_s11, 7  ;;  %p2147_p10 = pnand %p1822_p8, %p2115_p5 }
  0x16   : > { %s2141_s24 = scalar_lea.hbm %s2885_s3, %s1504_s14  ;;  %s2151_s27 = scalar_lea.sflag [#allocation7], %s169_s6 }
  0x17   : > { %s1904_s30 = scalar_lea.hbm %s2141_s24, 8192  ;;  %p1906_p12 = pneg %p2147_p10 }
  0x18   : > { %p1905_p11 = scmp.ne.s32.totalorder %s2141_s24, %s1904_s30  ;;  %s1909_s5 = scalar_lea.hbm %s2885_s3, 32768 }
  0x19   : > { %p1910_p1 = scmp.lt.u32.totalorder %s2141_s24, %s2885_s3  ;;  %p1911_p2 = scmp.lt.u32.totalorder %s1909_s5, %s1904_s30 }
  0x1a   : > { %p1907_p13 = pnand %p1906_p12, %p1905_p11  ;;  %p1913_p4 = scmp.lt.u32.totalorder %s1904_s30, %s2141_s24 }
  0x1b   : > { %p1912_p3 = por %p1911_p2, %p1910_p1 }
  0x1c   : > { %p1908_p0 = pneg %p1907_p13 }
  0x1d   : > { %p1914_p5 = por %p1913_p4, %p1912_p3 }
  0x1f   : > { %p1915_p6 = pnand %p1914_p5, %p1908_p0 }
  0x21   : > { %1918 = shalt.err (!%p1915_p6)
}
  0x22   : > { %s1919_s6 = scalar_lea.vmem %s2136_s13, 8192  ;;  %s2032_s10 = smov [#allocation6]  }
  0x23   : > { %p1920_p8 = scmp.ne.s32.totalorder %s2136_s13, %s1919_s6  ;;  %s1924_s11 = sshll.u32 %s2032_s10, 4  ;;  %s1925_s11 = int_to_ptr.vmem [resolvable:$false] %s1924_s11 }
  0x24   : > { %s1926_s12 = scalar_lea.vmem %s1925_s11, 16384  ;;  %p1927_p13 = scmp.lt.s32.totalorder %s2136_s13, %s1925_s11 }
  0x25   : > { %p1922_p9 = pnand %p1920_p8, %p1906_p12  ;;  %p1928_p1 = scmp.lt.s32.totalorder %s1926_s12, %s1919_s6 }
  0x27   : > { %p1923_p11 = pneg %p1922_p9  ;;  %p1929_p2 = por %p1928_p1, %p1927_p13 }
  0x29   : > { %p1930_p3 = pnand %p1929_p2, %p1923_p11 }
  0x2b   : > { %1933 = shalt.err (!%p1930_p3)
}
  0x2c   : > { %s2033_s14 = smov 512   ;;  %s2034_s15 = smov 256  }
  0x2d   : > { %s2035_s30 = smov 16   ;;  %p1505_p12 = scmp.ge.s32.totalorder %s2030_s22, 1 }
  0x2e   : > { %1821 = dma.hbm_to_vmem [thread:$0]  (!%p2147_p10), %s2141_s24, 8192, %s2136_s13, %s2151_s27, %s2033_s14, %s2034_s15, %s2035_s30  }
  0x2f   : > { %p191_p0 = scmp.lt.s32.totalorder %s2030_s22, 5 }
  0x31   : > { %p192_p4 = pnand %p1505_p12, %p191_p0 }
  0x32   : > { %s197_s23 = sand.u32 (!%p192_p4), 1, %s2006_s16  }
  0x33   : > { %195 = sbr.rel (%p192_p4) target bundleno = 1245 (0x4dd), region = 36  ;;  %s1506_s28 = sshll.u32 (!%p192_p4), %s197_s23, 9 }
  0x34   : > { %s198_s5 = scalar_lea.sflag (!%p192_p4), [#allocation7], %s197_s23  ;;  %s2182_s7 = scalar_lea.vmem (!%p192_p4), [#allocation6], %s1506_s28 }
  0x3a   : > { %1993 = dma.done.wait (%p2123_p7), %s198_s5, 8192  }
  0x3b   : > { %1995 = vsyncadd (%p2123_p7), %s198_s5, 4294959104  ;;  %p223_p5 = scmp.eq.s32.totalorder %s2018_s19, 0  ;;  %p224_p10 = scmp.eq.s32.totalorder %s2014_s18, 0 }
  0x3d   : > { %p225_p6 = pnand %p224_p10, %p223_p5 }
  0x3e   : > { %v232_v0 = vld [vmem:[%s2883_s1 + $0x8] sm:$0xff] (!%p225_p6)  ;;  %v229_v1 = vld [vmem:[%s2882_s0] sm:$0xff] (!%p225_p6)  ;;  %v233_v2 = vld [vmem:[%s2883_s1 + $0x10] sm:$0xff] (!%p225_p6)  ;;  %vm359_vm0 = vcmask (!%p225_p6), 261120   ;;  %vm1168_vm2 = vcmask (!%p225_p6), 7168  }
  0x3f   : > { %228 = sbr.rel (%p225_p6) target bundleno = 633 (0x279), region = 44  ;;  %v2199_v3 = vmul.f32 (!%p225_p6), 0.16666667, %v232_v0  ;;  %v2201_v4 = vmul.f32 (!%p225_p6), 0.16666667, %v229_v1  ;;  %v231_v6 = vld [vmem:[%s2883_s1] sm:$0xff] (!%p225_p6)  ;;  %vm2302_vm1 = vmpackc.low (!%p225_p6), %vm359_vm0, %vm359_vm0 }
  0x40   : > { %v2203_v5 = vmul.f32 (!%p225_p6), 0.16666667, %v233_v2  ;;  %v235_v7 = vld [vmem:[%s2883_s1 + $0x20] sm:$0xff] (!%p225_p6)  ;;  %v234_v8 = vld [vmem:[%s2883_s1 + $0x18] sm:$0xff] (!%p225_p6)  ;;  %v2220_v12 = vmul.f32 (!%p225_p6), 0.16666667, %v231_v6 }
  0x41   : > { %v702_v9 = vmul.f32 (!%p225_p6), %v2199_v3, %v2199_v3  ;;  %v697_v10 = vmul.f32 (!%p225_p6), %v2201_v4, %v2201_v4  ;;  %v237_v13 = vld [vmem:[%s2883_s1 + $0x30] sm:$0xff] (!%p225_p6)  ;;  %1616 = vmatprep.mubr.msk.f32.mxu0 (!%p225_p6), %vm359_vm0, %v2201_v4  ;;  %1650 = vmatprep.mubr.msk.f32.mxu1 (!%p225_p6), %vm359_vm0, %v2201_v4  ;;  %v2229_v14 = vmul.f32 (!%p225_p6), 0.16666667, %v235_v7  ;;  %v2231_v15 = vmul.f32 (!%p225_p6), 0.16666667, %v234_v8  ;;  %v236_v16 = vld [vmem:[%s2883_s1 + $0x28] sm:$0xff] (!%p225_p6) }
  0x42   : > { %v703_v11 = vmul.f32 (!%p225_p6), %v2203_v5, %v2203_v5  ;;  %v701_v19 = vmul.f32 (!%p225_p6), %v2220_v12, %v2220_v12  ;;  %v2241_v21 = vmul.f32 (!%p225_p6), 0.16666667, %v237_v13  ;;  %v2248_v25 = vmul.f32 (!%p225_p6), 0.16666667, %v236_v16  ;;  %v239_v26 = vld [vmem:[%s2883_s1 + $0x40] sm:$0xff] (!%p225_p6)  ;;  %v238_v27 = vld [vmem:[%s2883_s1 + $0x38] sm:$0xff] (!%p225_p6) }
  0x43   : > { %v768_v17 = vsel (!%p225_p6), %vm359_vm0, %v702_v9, 0.0  ;;  %v698_v18 = vsel (!%p225_p6), %vm359_vm0, %v697_v10, 0.0  ;;  %v705_v23 = vmul.f32 (!%p225_p6), %v2229_v14, %v2229_v14  ;;  %v704_v24 = vmul.f32 (!%p225_p6), %v2231_v15, %v2231_v15  ;;  %v247_v34 = vld [vmem:[%s2883_s1 + $0x80] sm:$0xff] (!%p225_p6)  ;;  %v241_v35 = vld [vmem:[%s2883_s1 + $0x50] sm:$0xff] (!%p225_p6)  ;;  %v240_v36 = vld [vmem:[%s2883_s1 + $0x48] sm:$0xff] (!%p225_p6) }
  0x44   : > { %769 = vadd.xlane.f32.xlu1 (!%p225_p6), %v768_v17  ;;  %699 = vadd.xlane.f32.xlu0 (!%p225_p6), %v698_v18  ;;  %v771_v20 = vsel (!%p225_p6), %vm359_vm0, %v703_v11, 0.0  ;;  %v765_v22 = vsel (!%p225_p6), %vm359_vm0, %v701_v19, 0.0  ;;  %v2256_v28 = vmul.f32 (!%p225_p6), 0.16666667, %v239_v26  ;;  %v2258_v29 = vmul.f32 (!%p225_p6), 0.16666667, %v238_v27 }
  0x45   : > { %v777_v30 = vsel (!%p225_p6), %vm359_vm0, %v705_v23, 0.0  ;;  %v774_v31 = vsel (!%p225_p6), %vm359_vm0, %v704_v24, 0.0  ;;  %v707_v32 = vmul.f32 (!%p225_p6), %v2241_v21, %v2241_v21  ;;  %v706_v33 = vmul.f32 (!%p225_p6), %v2248_v25, %v2248_v25  ;;  %v248_v37 = vld [vmem:[%s2883_s1 + $0x88] sm:$0xff] (!%p225_p6)  ;;  %v243_v40 = vld [vmem:[%s2883_s1 + $0x60] sm:$0xff] (!%p225_p6)  ;;  %v249_v42 = vld [vmem:[%s2883_s1 + $0x90] sm:$0xff] (!%p225_p6) }
  0x46   : > { %v709_v38 = vmul.f32 %v2256_v28, %v2256_v28  ;;  %v708_v39 = vmul.f32 %v2258_v29, %v2258_v29  ;;  %v311_v41 = vmul.f32 0.16666667, %v247_v34  ;;  %v250_v43 = vld [vmem:[%s2883_s1 + $0x98] sm:$0xff]  ;;  %v2293_v46 = vmul.f32 0.16666667, %v241_v35  ;;  %v245_v61 = vld [vmem:[%s2883_s1 + $0x70] sm:$0xff] }
  0x47   : > { %v783_v44 = vsel %vm359_vm0, %v707_v32, 0.0  ;;  %v780_v45 = vsel %vm359_vm0, %v706_v33, 0.0  ;;  %v2295_v47 = vmul.f32 0.16666667, %v240_v36  ;;  %v242_v48 = vld [vmem:[%s2883_s1 + $0x58] sm:$0xff]  ;;  %v1655_v51 = vpack.c.bf16 %v2199_v3, %v2220_v12  ;;  %v244_v63 = vld [vmem:[%s2883_s1 + $0x68] sm:$0xff] }
  0x48   : > { %772 = vadd.xlane.f32.xlu1 %v771_v20  ;;  %766 = vadd.xlane.f32.xlu0 %v765_v22  ;;  %v312_v49 = vmul.f32 0.16666667, %v248_v37  ;;  %v313_v52 = vmul.f32 0.16666667, %v249_v42  ;;  %v314_v53 = vmul.f32 0.16666667, %v250_v43  ;;  %v711_v58 = vmul.f32 %v2293_v46, %v2293_v46 }
  0x49   : > { %v789_v54 = vsel %vm359_vm0, %v709_v38, 0.0  ;;  %v786_v55 = vsel %vm359_vm0, %v708_v39, 0.0  ;;  %v2310_v56 = vmul.f32 0.16666667, %v243_v40  ;;  %v710_v59 = vmul.f32 %v2295_v47, %v2295_v47  ;;  %v251_v2 = vld [vmem:[%s2883_s1 + $0xa0] sm:$0xff]  ;;  %v252_v3 = vld [vmem:[%s2883_s1 + $0xa8] sm:$0xff] }
  0x4a   : > { %v1652_v57 = vpack.c.bf16 %v312_v49, %v311_v41  ;;  %v2316_v60 = vmul.f32 0.16666667, %v242_v48  ;;  %v1658_v62 = vpack.c.bf16 %v314_v53, %v313_v52  ;;  %v2330_v1 = vmul.f32 0.16666667, %v245_v61  ;;  %v246_v10 = vld [vmem:[%s2883_s1 + $0x78] sm:$0xff]  ;;  %v255_v39 = vld [vmem:[%s2883_s1 + $0xc0] sm:$0xff] }
  0x4b   : > { %v713_v0 = vmul.f32 %v2310_v56, %v2310_v56  ;;  %v795_v6 = vsel %vm359_vm0, %v711_v58, 0.0  ;;  %v792_v7 = vsel %vm359_vm0, %v710_v59, 0.0  ;;  %v2342_v9 = vmul.f32 0.16666667, %v244_v63  ;;  %v254_v23 = vld [vmem:[%s2883_s1 + $0xb8] sm:$0xff]  ;;  %v256_v40 = vld [vmem:[%s2883_s1 + $0xc8] sm:$0xff] }
  0x4c   : > { %778 = vadd.xlane.f32.xlu1 %v777_v30  ;;  %775 = vadd.xlane.f32.xlu0 %v774_v31  ;;  %v712_v8 = vmul.f32 %v2316_v60, %v2316_v60  ;;  %v1661_v11 = vpack.c.bf16 %v2231_v15, %v2203_v5  ;;  %v315_v12 = vmul.f32 0.16666667, %v251_v2  ;;  %v316_v13 = vmul.f32 0.16666667, %v252_v3  ;;  %v253_v15 = vld [vmem:[%s2883_s1 + $0xb0] sm:$0xff] }
  0x4d   : > { %1654 = vmatprep.subr.msk.bf16.mxu0 %vm2302_vm1, %v1652_v57  ;;  %v801_v16 = vsel %vm359_vm0, %v713_v0, 0.0  ;;  %v715_v17 = vmul.f32 %v2330_v1, %v2330_v1  ;;  %v714_v19 = vmul.f32 %v2342_v9, %v2342_v9  ;;  %v2357_v20 = vmul.f32 0.16666667, %v246_v10  ;;  %v281_v48 = vld [vmem:[%s2883_s1 + $0x190] sm:$0xff] }
  0x4e   : > { %1657 = vmatpush3.bf16.xpose.msk.msra.mxu0 %vm2302_vm1, %v1655_v51  ;;  %v798_v18 = vsel %vm359_vm0, %v712_v8, 0.0  ;;  %v1664_v22 = vpack.c.bf16 %v316_v13, %v315_v12  ;;  %v717_v5 = vmul.f32 %v311_v41, %v311_v41  ;;  %v1667_v30 = vpack.c.bf16 %v2248_v25, %v2229_v14  ;;  %v279_v14 = vld [vmem:[%s2883_s1 + $0x180] sm:$0xff]  ;;  %v280_v25 = vld [vmem:[%s2883_s1 + $0x188] sm:$0xff] }
  0x4f   : > { %1660 = vmatprep.subr.msk.bf16.mxu0 %vm2302_vm1, %v1658_v62  ;;  %v807_v24 = vsel %vm359_vm0, %v715_v17, 0.0  ;;  %v804_v26 = vsel %vm359_vm0, %v714_v19, 0.0  ;;  %v716_v27 = vmul.f32 %v2357_v20, %v2357_v20  ;;  %v317_v31 = vmul.f32 0.16666667, %v253_v15  ;;  %v263_v41 = vld [vmem:[%s2883_s1 + $0x100] sm:$0xff] }
  0x50   : > { %784 = vadd.xlane.f32.xlu1 %v783_v44  ;;  %781 = vadd.xlane.f32.xlu0 %v780_v45  ;;  %v318_v32 = vmul.f32 0.16666667, %v254_v23  ;;  %v813_v33 = vsel %vm359_vm0, %v717_v5, 0.0  ;;  %v719_v35 = vmul.f32 %v313_v52, %v313_v52  ;;  %v718_v36 = vmul.f32 %v312_v49, %v312_v49  ;;  %v264_v45 = vld [vmem:[%s2883_s1 + $0x108] sm:$0xff]  ;;  %v282_v49 = vld [vmem:[%s2883_s1 + $0x198] sm:$0xff]  ;;  %v259_v8 = vld [vmem:[%s2883_s1 + $0xe0] sm:$0xff] }
  0x51   : > { %v810_v34 = vsel %vm359_vm0, %v716_v27, 0.0  ;;  %v720_v38 = vmul.f32 %v314_v53, %v314_v53  ;;  %v721_v44 = vmul.f32 %v315_v12, %v315_v12  ;;  %v319_v51 = vmul.f32 0.16666667, %v255_v39  ;;  %v258_v12 = vld [vmem:[%s2883_s1 + $0xd8] sm:$0xff]  ;;  %v284_v5 = vld [vmem:[%s2883_s1 + $0x1a8] sm:$0xff]  ;;  %v267_v39 = vld [vmem:[%s2883_s1 + $0x120] sm:$0xff] }
  0x52   : > { %v1670_v37 = vpack.c.bf16 %v318_v32, %v317_v31  ;;  %v819_v42 = vsel %vm359_vm0, %v719_v35, 0.0  ;;  %v816_v43 = vsel %vm359_vm0, %v718_v36, 0.0  ;;  %v2407_v52 = vmul.f32 0.16666667, %v279_v14  ;;  %v268_v14 = vld [vmem:[%s2883_s1 + $0x128] sm:$0xff] }
  0x53   : > { %v2409_v53 = vmul.f32 0.16666667, %v280_v25  ;;  %v320_v57 = vmul.f32 0.16666667, %v256_v40  ;;  %v2414_v58 = vmul.f32 0.16666667, %v263_v41  ;;  %v723_v2 = vmul.f32 %v317_v31, %v317_v31 }
  0x54   : > { %790 = vadd.xlane.f32.xlu1 %v789_v54  ;;  %787 = vadd.xlane.f32.xlu0 %v786_v55  ;;  %v1673_v54 = vpack.c.bf16 %v2258_v29, %v2241_v21  ;;  %v822_v55 = vsel %vm359_vm0, %v720_v38, 0.0  ;;  %v2416_v59 = vmul.f32 0.16666667, %v264_v45  ;;  %v2418_v61 = vmul.f32 0.16666667, %v281_v48  ;;  %v257_v29 = vld [vmem:[%s2883_s1 + $0xd0] sm:$0xff] }
  0x55   : > { %v2420_v62 = vmul.f32 0.16666667, %v282_v49  ;;  %v1700_v63 = vpack.c.bf16 %v2409_v53, %v2407_v52  ;;  %v825_v0 = vsel %vm359_vm0, %v721_v44, 0.0  ;;  %v722_v21 = vmul.f32 %v316_v13, %v316_v13  ;;  %v265_v13 = vld [vmem:[%s2883_s1 + $0x110] sm:$0xff]  ;;  %v286_v44 = vld [vmem:[%s2883_s1 + $0x1b8] sm:$0xff] }
  0x56   : > { %1663 = vmatpush3.bf16.xpose.msk.msra.mxu0 %vm2302_vm1, %v1661_v11  ;;  %v1676_v3 = vpack.c.bf16 %v320_v57, %v319_v51  ;;  %v725_v10 = vmul.f32 %v319_v51, %v319_v51  ;;  %v321_v11 = vmul.f32 0.16666667, %v257_v29  ;;  %v831_v17 = vsel %vm359_vm0, %v723_v2, 0.0 }
  0x57   : > { %1666 = vmatprep.subr.msk.bf16.mxu0 %vm2302_vm1, %v1664_v22  ;;  %1702 = vmatprep.subr.msk.bf16.mxu1 %vm2302_vm1, %v1700_v63  ;;  %v724_v19 = vmul.f32 %v318_v32, %v318_v32  ;;  %v283_v22 = vld [vmem:[%s2883_s1 + $0x1a0] sm:$0xff]  ;;  %v323_v15 = vmul.f32 0.16666667, %v259_v8  ;;  %v1679_v23 = vpack.c.bf16 %v2295_v47, %v2256_v28  ;;  %v726_v35 = vmul.f32 %v320_v57, %v320_v57  ;;  %v260_v47 = vld [vmem:[%s2883_s1 + $0xe8] sm:$0xff] }
  0x58   : > { %796 = vadd.xlane.f32.xlu1 %v795_v6  ;;  %793 = vadd.xlane.f32.xlu0 %v792_v7  ;;  %v1706_v6 = vpack.c.bf16 %v2420_v62, %v2418_v61  ;;  %v1703_v7 = vpack.c.bf16 %v2416_v59, %v2414_v58  ;;  %v727_v31 = vmul.f32 %v321_v11, %v321_v11  ;;  %v2469_v32 = vmul.f32 0.16666667, %v283_v22  ;;  %v287_v8 = vld [vmem:[%s2883_s1 + $0x1c0] sm:$0xff] }
  0x59   : > { %v729_v38 = vmul.f32 %v323_v15, %v323_v15  ;;  %v840_v40 = vsel %vm359_vm0, %v726_v35, 0.0  ;;  %v1685_v45 = vpack.c.bf16 %v2316_v60, %v2293_v46  ;;  %v2505_v48 = vmul.f32 0.16666667, %v267_v39  ;;  %v261_v60 = vld [vmem:[%s2883_s1 + $0xf0] sm:$0xff] }
  0x5a   : > { %1705 = vmatpush3.bf16.xpose.msk.msra.mxu1 %vm2302_vm1, %v1703_v7  ;;  %v843_v25 = vsel %vm359_vm0, %v727_v31, 0.0  ;;  %v2507_v49 = vmul.f32 0.16666667, %v268_v14  ;;  %v2514_v57 = vmul.f32 0.16666667, %v286_v44  ;;  %v270_v7 = vld [vmem:[%s2883_s1 + $0x138] sm:$0xff]  ;;  %v753_v44 = vmul.f32 %v2469_v32, %v2469_v32 }
  0x5b   : > { %1708 = vmatprep.subr.msk.bf16.mxu1 %vm2302_vm1, %v1706_v6  ;;  %v849_v51 = vsel %vm359_vm0, %v729_v38, 0.0  ;;  %v269_v6 = vld [vmem:[%s2883_s1 + $0x130] sm:$0xff]  ;;  %v2564_v22 = vmul.f32 0.16666667, %v287_v8 }
  0x5c   : > { %802 = vadd.xlane.f32.xlu1 %v801_v16  ;;  %799 = vadd.xlane.f32.xlu0 %v798_v18  ;;  %v266_v16 = vld [vmem:[%s2883_s1 + $0x118] sm:$0xff]  ;;  %v828_v18 = vsel %vm359_vm0, %v722_v21, 0.0  ;;  %v1715_v46 = vpack.c.bf16 %v2507_v49, %v2505_v48 }
  0x5d   : > { %v2466_v27 = vmul.f32 0.16666667, %v266_v16  ;;  %v262_v21 = vld [vmem:[%s2883_s1 + $0xf8] sm:$0xff]  ;;  %v333_v16 = vmul.f32 0.16666667, %v269_v6 }
  0x5e   : > { %1669 = vmatpush3.bf16.xpose.msk.msra.mxu0 %vm2302_vm1, %v1667_v30  ;;  %v837_v30 = vsel %vm359_vm0, %v725_v10, 0.0 }
  0x5f   : > { %1672 = vmatprep.subr.msk.bf16.mxu0 %vm2302_vm1, %v1670_v37  ;;  %v736_v35 = vmul.f32 %v2466_v27, %v2466_v27 }
  0x60   : > { %808 = vadd.xlane.f32.xlu1 %v807_v24  ;;  %805 = vadd.xlane.f32.xlu0 %v804_v26  ;;  %v322_v24 = vmul.f32 0.16666667, %v258_v12  ;;  %v2464_v26 = vmul.f32 0.16666667, %v265_v13  ;;  %v2548_v12 = vmul.f32 0.16666667, %v262_v21 }
  0x61   : > { %v288_v13 = vld [vmem:[%s2883_s1 + $0x1c8] sm:$0xff] }
  0x62   : > { %v1682_v36 = vpack.c.bf16 %v322_v24, %v321_v11  ;;  %v1709_v28 = vpack.c.bf16 %v2466_v27, %v2464_v26  ;;  %v728_v41 = vmul.f32 %v322_v24, %v322_v24  ;;  %v734_v11 = vmul.f32 %v2416_v59, %v2416_v59 }
  0x63   : > { %v1691_v59 = vpack.c.bf16 %v2342_v9, %v2310_v56 }
  0x64   : > { %814 = vadd.xlane.f32.xlu1 %v813_v33  ;;  %811 = vadd.xlane.f32.xlu0 %v810_v34  ;;  %v2471_v33 = vmul.f32 0.16666667, %v284_v5  ;;  %v834_v34 = vsel %vm359_vm0, %v724_v19, 0.0  ;;  %v846_v63 = vsel %vm359_vm0, %v728_v41, 0.0  ;;  %v750_v19 = vmul.f32 %v2409_v53, %v2409_v53  ;;  %v271_v53 = vld [vmem:[%s2883_s1 + $0x140] sm:$0xff]  ;;  %v274_v41 = vld [vmem:[%s2883_s1 + $0x158] sm:$0xff] }
  0x65   : > { %1711 = vmatpush3.bf16.xpose.msk.msra.mxu1 %vm2302_vm1, %v1709_v28  ;;  %v2566_v5 = vmul.f32 0.16666667, %v288_v13  ;;  %v290_v28 = vld [vmem:[%s2883_s1 + $0x1d8] sm:$0xff]  ;;  %v335_v27 = vmul.f32 0.16666667, %v271_v53 }
  0x66   : > { %1675 = vmatpush3.bf16.xpose.msk.msra.mxu0 %vm2302_vm1, %v1673_v54  ;;  %v1712_v37 = vpack.c.bf16 %v2471_v33, %v2469_v32  ;;  %v733_v54 = vmul.f32 %v2414_v58, %v2414_v58  ;;  %v2610_v39 = vmul.f32 0.16666667, %v290_v28  ;;  %v754_v32 = vmul.f32 %v2471_v33, %v2471_v33  ;;  %v275_v33 = vld [vmem:[%s2883_s1 + $0x160] sm:$0xff] }
  0x67   : > { %1678 = vmatprep.subr.msk.bf16.mxu0 %vm2302_vm1, %v1676_v3  ;;  %v749_v3 = vmul.f32 %v2407_v52, %v2407_v52  ;;  %v2546_v52 = vmul.f32 0.16666667, %v261_v60  ;;  %v1724_v24 = vpack.c.bf16 %v2566_v5, %v2564_v22  ;;  %v739_v60 = vmul.f32 %v333_v16, %v333_v16 }
  0x68   : > { %820 = vadd.xlane.f32.xlu1 %v819_v42  ;;  %817 = vadd.xlane.f32.xlu0 %v816_v43  ;;  %v324_v42 = vmul.f32 0.16666667, %v260_v47  ;;  %v285_v43 = vld [vmem:[%s2883_s1 + $0x1b0] sm:$0xff]  ;;  %v861_v29 = vsel %vm359_vm0, %v733_v54, 0.0  ;;  %v339_v13 = vmul.f32 0.16666667, %v275_v33 }
  0x69   : > { %1714 = vmatprep.subr.msk.bf16.mxu1 %vm2302_vm1, %v1712_v37  ;;  %v1694_v56 = vpack.c.bf16 %v2548_v12, %v2546_v52  ;;  %v752_v37 = vmul.f32 %v2420_v62, %v2420_v62  ;;  %v273_v62 = vld [vmem:[%s2883_s1 + $0x150] sm:$0xff]  ;;  %v879_v6 = vsel %vm359_vm0, %v739_v60, 0.0  ;;  %v731_v50 = vmul.f32 %v2546_v52, %v2546_v52 }
  0x6a   : > { %v730_v2 = vmul.f32 %v324_v42, %v324_v42  ;;  %v337_v54 = vmul.f32 0.16666667, %v273_v62 }
  0x6c   : > { %826 = vadd.xlane.f32.xlu1 %v825_v0  ;;  %823 = vadd.xlane.f32.xlu0 %v822_v55  ;;  %v2512_v55 = vmul.f32 0.16666667, %v285_v43  ;;  %v1688_v0 = vpack.c.bf16 %v324_v42, %v323_v15  ;;  %v852_v10 = vsel %vm359_vm0, %v730_v2, 0.0  ;;  %v864_v15 = vsel %vm359_vm0, %v734_v11, 0.0  ;;  %v294_v11 = vld [vmem:[%s2883_s1 + $0x1f8] sm:$0xff] }
  0x6d   : > { %1717 = vmatpush3.bf16.xpose.msk.msra.mxu1 %vm2302_vm1, %v1715_v46  ;;  %v918_v42 = vsel %vm359_vm0, %v752_v37, 0.0  ;;  %v921_v2 = vsel %vm359_vm0, %v753_v44, 0.0  ;;  %v743_v28 = vmul.f32 %v337_v54, %v337_v54 }
  0x6e   : > { %1681 = vmatpush3.bf16.xpose.msk.msra.mxu0 %vm2302_vm1, %v1679_v23  ;;  %v1718_v58 = vpack.c.bf16 %v2514_v57, %v2512_v55  ;;  %v735_v23 = vmul.f32 %v2464_v26, %v2464_v26  ;;  %v272_v26 = vld [vmem:[%s2883_s1 + $0x148] sm:$0xff] }
  0x6f   : > { %1684 = vmatprep.subr.msk.bf16.mxu0 %vm2302_vm1, %v1682_v36  ;;  %v289_v36 = vld [vmem:[%s2883_s1 + $0x1d0] sm:$0xff]  ;;  %v2604_v47 = vmul.f32 0.16666667, %v272_v26 }
  0x70   : > { %832 = vadd.xlane.f32.xlu1 %v831_v17  ;;  %829 = vadd.xlane.f32.xlu0 %v828_v18  ;;  %v2559_v17 = vmul.f32 0.16666667, %v270_v7  ;;  %v909_v18 = vsel %vm359_vm0, %v749_v3, 0.0  ;;  %v867_v31 = vsel %vm359_vm0, %v735_v23, 0.0  ;;  %v2608_v38 = vmul.f32 0.16666667, %v289_v36 }
  0x71   : > { %1720 = vmatprep.subr.msk.bf16.mxu1 %vm2302_vm1, %v1718_v58  ;;  %v924_v3 = vsel %vm359_vm0, %v754_v32, 0.0  ;;  %v755_v7 = vmul.f32 %v2512_v55, %v2512_v55  ;;  %v756_v55 = vmul.f32 %v2514_v57, %v2514_v57  ;;  %v277_v57 = vld [vmem:[%s2883_s1 + $0x170] sm:$0xff]  ;;  %v758_v36 = vmul.f32 %v2566_v5, %v2566_v5 }
  0x72   : > { %v1721_v9 = vpack.c.bf16 %v2559_v17, %v333_v16  ;;  %v740_v8 = vmul.f32 %v2559_v17, %v2559_v17  ;;  %v2679_v17 = vmul.f32 0.16666667, %v294_v11  ;;  %v759_v37 = vmul.f32 %v2608_v38, %v2608_v38 }
  0x73   : > { %v930_v53 = vsel %vm359_vm0, %v756_v55, 0.0 }
  0x74   : > { %838 = vadd.xlane.f32.xlu1 %v837_v30  ;;  %835 = vadd.xlane.f32.xlu0 %v834_v34  ;;  %v912_v30 = vsel %vm359_vm0, %v750_v19, 0.0  ;;  %v751_v34 = vmul.f32 %v2418_v61, %v2418_v61  ;;  %v1697_v61 = vpack.c.bf16 %v2357_v20, %v2330_v1  ;;  %v1727_v1 = vpack.c.bf16 %v2604_v47, %v335_v27 }
  0x75   : > { %1723 = vmatpush3.bf16.xpose.msk.msra.mxu1 %vm2302_vm1, %v1721_v9  ;;  %v1730_v20 = vpack.c.bf16 %v2610_v39, %v2608_v38  ;;  %v882_v19 = vsel %vm359_vm0, %v740_v8, 0.0  ;;  %v757_v9 = vmul.f32 %v2564_v22, %v2564_v22  ;;  %v341_v22 = vmul.f32 0.16666667, %v277_v57 }
  0x76   : > { %1687 = vmatpush3.bf16.xpose.msk.msra.mxu0 %vm2302_vm1, %v1685_v45  ;;  %1726 = vmatprep.subr.msk.bf16.mxu1 %vm2302_vm1, %v1724_v24  ;;  %v915_v14 = vsel %vm359_vm0, %v751_v34, 0.0  ;;  %v738_v45 = vmul.f32 %v2507_v49, %v2507_v49  ;;  %v278_v24 = vld [vmem:[%s2883_s1 + $0x178] sm:$0xff] }
  0x77   : > { %1690 = vmatprep.subr.msk.bf16.mxu0 %vm2302_vm1, %v1688_v0  ;;  %v933_v34 = vsel %vm359_vm0, %v757_v9, 0.0 }
  0x78   : > { %844 = vadd.xlane.f32.xlu1 %v843_v25  ;;  %841 = vadd.xlane.f32.xlu0 %v840_v40  ;;  %v870_v25 = vsel %vm359_vm0, %v736_v35, 0.0  ;;  %v737_v40 = vmul.f32 %v2505_v48, %v2505_v48  ;;  %v291_v48 = vld [vmem:[%s2883_s1 + $0x1e0] sm:$0xff]  ;;  %v876_v46 = vsel %vm359_vm0, %v738_v45, 0.0  ;;  %v747_v45 = vmul.f32 %v341_v22, %v341_v22 }
  0x79   : > { %v2645_v49 = vmul.f32 0.16666667, %v291_v48 }
  0x7a   : > { %v873_v43 = vsel %vm359_vm0, %v737_v40, 0.0  ;;  %v760_v40 = vmul.f32 %v2610_v39, %v2610_v39  ;;  %v855_v39 = vsel %vm359_vm0, %v731_v50, 0.0 }
  0x7c   : > { %850 = vadd.xlane.f32.xlu1 %v849_v51  ;;  %847 = vadd.xlane.f32.xlu0 %v846_v63  ;;  %v292_v51 = vld [vmem:[%s2883_s1 + $0x1e8] sm:$0xff]  ;;  %v338_v63 = vmul.f32 0.16666667, %v274_v41 }
  0x7d   : > { %1729 = vmatpush3.bf16.xpose.msk.msra.mxu1 %vm2302_vm1, %v1727_v1  ;;  %v2647_v0 = vmul.f32 0.16666667, %v292_v51  ;;  %v745_v1 = vmul.f32 %v339_v13, %v339_v13  ;;  %v903_v51 = vsel %vm359_vm0, %v747_v45, 0.0 }
  0x7e   : > { %1693 = vmatpush3.bf16.xpose.msk.msra.mxu0 %vm2302_vm1, %v1691_v59  ;;  %1732 = vmatprep.subr.msk.bf16.mxu1 %vm2302_vm1, %v1730_v20  ;;  %v1733_v21 = vpack.c.bf16 %v338_v63, %v337_v54  ;;  %v942_v20 = vsel %vm359_vm0, %v760_v40, 0.0 }
  0x7f   : > { %1696 = vmatprep.subr.msk.bf16.mxu0 %vm2302_vm1, %v1694_v56  ;;  %v1736_v58 = vpack.c.bf16 %v2647_v0, %v2645_v49  ;;  %v897_v38 = vsel %vm359_vm0, %v745_v1, 0.0 }
  0x80   : > { %862 = vadd.xlane.f32.xlu1 %v861_v29  ;;  %853 = vadd.xlane.f32.xlu0 %v852_v10  ;;  %v276_v29 = vld [vmem:[%s2883_s1 + $0x168] sm:$0xff]  ;;  %v293_v10 = vld [vmem:[%s2883_s1 + $0x1f0] sm:$0xff] }
  0x81   : > { %v340_v59 = vmul.f32 0.16666667, %v276_v29  ;;  %v357_v16 = vmul.f32 0.16666667, %v293_v10 }
  0x83   : > { %v1739_v23 = vpack.c.bf16 %v340_v59, %v339_v13  ;;  %v1742_v56 = vpack.c.bf16 %v2679_v17, %v357_v16  ;;  %v746_v62 = vmul.f32 %v340_v59, %v340_v59 }
  0x84   : > { %910 = vadd.xlane.f32.xlu1 %v909_v18  ;;  %865 = vadd.xlane.f32.xlu0 %v864_v15  ;;  %v927_v18 = vsel %vm359_vm0, %v755_v7, 0.0  ;;  %v741_v15 = vmul.f32 %v335_v27, %v335_v27  ;;  %v936_v27 = vsel %vm359_vm0, %v758_v36, 0.0 }
  0x85   : > { %1735 = vmatpush3.bf16.xpose.msk.msra.mxu1 %vm2302_vm1, %v1733_v21  ;;  %v900_v41 = vsel %vm359_vm0, %v746_v62, 0.0 }
  0x86   : > { %1699 = vmatpush3.bf16.xpose.msk.msra.mxu0 %vm2302_vm1, %v1697_v61  ;;  %1738 = vmatprep.subr.msk.bf16.mxu1 %vm2302_vm1, %v1736_v58  ;;  %v885_v26 = vsel %vm359_vm0, %v741_v15, 0.0 }
  0x88   : > { %913 = vadd.xlane.f32.xlu1 %v912_v30  ;;  %868 = vadd.xlane.f32.xlu0 %v867_v31  ;;  %v742_v30 = vmul.f32 %v2604_v47, %v2604_v47  ;;  %v342_v31 = vmul.f32 0.16666667, %v278_v24  ;;  %v891_v47 = vsel %vm359_vm0, %v743_v28, 0.0 }
  0x8a   : > { %v888_v35 = vsel %vm359_vm0, %v742_v30, 0.0  ;;  %v1745_v61 = vpack.c.bf16 %v342_v31, %v341_v22  ;;  %v748_v54 = vmul.f32 %v342_v31, %v342_v31 }
  0x8c   : > { %916 = vadd.xlane.f32.xlu1 %v915_v14  ;;  %871 = vadd.xlane.f32.xlu0 %v870_v25  ;;  %v744_v14 = vmul.f32 %v338_v63, %v338_v63  ;;  %v939_v25 = vsel %vm359_vm0, %v759_v37, 0.0  ;;  %v906_v32 = vsel %vm359_vm0, %v748_v54, 0.0 }
  0x8d   : > { %1617 = vmatmul.mubr.msk.f32.vlgmr.msra.gmra.mrb[0].mxu0 %vm359_vm0, %v2201_v4  ;;  %1741 = vmatpush3.bf16.xpose.msk.msra.mxu1 %vm2302_vm1, %v1739_v23 }
  0x8e   : > { %1744 = vmatprep.subr.msk.bf16.mxu1 %vm2302_vm1, %v1742_v56  ;;  %v894_v5 = vsel %vm359_vm0, %v744_v14, 0.0 }
  0x90   : > { %919 = vadd.xlane.f32.xlu1 %v918_v42  ;;  %874 = vadd.xlane.f32.xlu0 %v873_v43  ;;  %v732_v42 = vmul.f32 %v2548_v12, %v2548_v12  ;;  %v761_v43 = vmul.f32 %v2645_v49, %v2645_v49  ;;  %v763_v12 = vmul.f32 %v357_v16, %v357_v16 }
  0x91   : > { %v764_v49 = vmul.f32 %v2679_v17, %v2679_v17 }
  0x92   : > { %v858_v44 = vsel %vm359_vm0, %v732_v42, 0.0  ;;  %v945_v52 = vsel %vm359_vm0, %v761_v43, 0.0  ;;  %v951_v63 = vsel %vm359_vm0, %v763_v12, 0.0 }
  0x94   : > { %922 = vadd.xlane.f32.xlu1 %v921_v2  ;;  %877 = vadd.xlane.f32.xlu0 %v876_v46 }
  0x95   : > { %1747 = vmatpush3.bf16.xpose.msk.msra.mxu1 %vm2302_vm1, %v1745_v61 }
  0x98   : > { %925 = vadd.xlane.f32.xlu1 %v924_v3  ;;  %880 = vadd.xlane.f32.xlu0 %v879_v6 }
  0x9c   : > { %928 = vadd.xlane.f32.xlu1 %v927_v18  ;;  %883 = vadd.xlane.f32.xlu0 %v882_v19 }
  0x9d   : > { %1651 = vmatmul.mubr.msk.f32.vlgmr.msra.gmra.mrb[0].mxu1 %vm359_vm0, %v2201_v4  ;;  %v762_v4 = vmul.f32 %v2647_v0, %v2647_v0  ;;  %v954_v0 = vsel %vm359_vm0, %v764_v49, 0.0 }
  0x9f   : > { %v948_v48 = vsel %vm359_vm0, %v762_v4, 0.0 }
  0xa0   : > { %931 = vadd.xlane.f32.xlu1 %v930_v53  ;;  %886 = vadd.xlane.f32.xlu0 %v885_v26 }
  0xa4   : > { %934 = vadd.xlane.f32.xlu1 %v933_v34  ;;  %889 = vadd.xlane.f32.xlu0 %v888_v35 }
  0xa8   : > { %937 = vadd.xlane.f32.xlu1 %v936_v27  ;;  %892 = vadd.xlane.f32.xlu0 %v891_v47 }
  0xac   : > { %940 = vadd.xlane.f32.xlu1 %v939_v25  ;;  %895 = vadd.xlane.f32.xlu0 %v894_v5 }
  0xb0   : > { %943 = vadd.xlane.f32.xlu1 %v942_v20  ;;  %898 = vadd.xlane.f32.xlu0 %v897_v38 }
  0xb4   : > { %901 = vadd.xlane.f32.xlu1 %v900_v41  ;;  %856 = vadd.xlane.f32.xlu0 %v855_v39 }
  0xb8   : > { %859 = vadd.xlane.f32.xlu1 %v858_v44  ;;  %946 = vadd.xlane.f32.xlu0 %v945_v52 }
  0xbc   : > { %949 = vadd.xlane.f32.xlu1 %v948_v48  ;;  %904 = vadd.xlane.f32.xlu0 %v903_v51 }
  0xc0   : > { %952 = vadd.xlane.f32.xlu1 %v951_v63  ;;  %907 = vadd.xlane.f32.xlu0 %v906_v32 }
  0xc4   : > { %955 = vadd.xlane.f32.xlu0 %v954_v0 }
  0xd1   : > { %v770_v2 = vpop.xlane.xlu1 %769  ;;  %v2737_v46 = vpop.xlane.xlu0 %699 }
  0xd5   : > { %v773_v60 = vpop.xlane.xlu1 %772  ;;  %v767_v21 = vpop.xlane.xlu0 %766 }
  0xd9   : > { %v779_v58 = vpop.xlane.xlu1 %778  ;;  %v776_v33 = vpop.xlane.xlu0 %775 }
  0xdd   : > { %v785_v29 = vpop.xlane.xlu1 %784  ;;  %v782_v3 = vpop.xlane.xlu0 %781 }
  0xe1   : > { %v791_v6 = vpop.xlane.xlu1 %790  ;;  %v788_v7 = vpop.xlane.xlu0 %787 }
  0xe5   : > { %v797_v8 = vpop.xlane.xlu1 %796  ;;  %v794_v10 = vpop.xlane.xlu0 %793 }
  0xe9   : > { %v803_v11 = vpop.xlane.xlu1 %802  ;;  %v800_v13 = vpop.xlane.xlu0 %799 }
  0xed   : > { %v809_v59 = vpop.xlane.xlu1 %808  ;;  %v806_v55 = vpop.xlane.xlu0 %805 }
  0xf1   : > { %v815_v16 = vpop.xlane.xlu1 %814  ;;  %v812_v17 = vpop.xlane.xlu0 %811 }
  0xf2   : > { %989 = vxpose.xlu0.b32.start [1/16] (narrow) %v815_v16, 8 }
  0xf3   : > { %957 = vxpose.xlu1.b32.start [1/16] (narrow) %v767_v21, 8 }
  0xf5   : > { %v821_v18 = vpop.xlane.xlu1 %820  ;;  %v818_v19 = vpop.xlane.xlu0 %817 }
  0xf6   : > { %990 = vxpose.xlu0.b32.cont [2/16] (narrow) %v818_v19, 8 }
  0xf7   : > { %958 = vxpose.xlu1.b32.cont [2/16] (narrow) %v770_v2, 8 }
  0xf9   : > { %v827_v15 = vpop.xlane.xlu1 %826  ;;  %v824_v23 = vpop.xlane.xlu0 %823 }
  0xfa   : > { %991 = vxpose.xlu0.b32.cont [3/16] (narrow) %v821_v18, 8 }
  0xfb   : > { %959 = vxpose.xlu1.b32.cont [3/16] (narrow) %v773_v60, 8  ;;  %v1085_v60 = vlaneseq }
  0xfd   : > { %v833_v56 = vpop.xlane.xlu1 %832  ;;  %v830_v9 = vpop.xlane.xlu0 %829 }
  0xfe   : > { %992 = vxpose.xlu0.b32.cont [4/16] (narrow) %v824_v23, 8 }
  0xff   : > { %960 = vxpose.xlu1.b32.cont [4/16] (narrow) %v776_v33, 8  ;;  %v2740_v33 = vshrl.u32 %v1085_v60, 7 }
 0x101   : > { %v839_v57 = vpop.xlane.xlu1 %838  ;;  %v836_v24 = vpop.xlane.xlu0 %835 }
 0x102   : > { %993 = vxpose.xlu0.b32.cont [5/16] (narrow) %v827_v15, 8 }
 0x103   : > { %961 = vxpose.xlu1.b32.cont [5/16] (narrow) %v779_v58, 8  ;;  %v2036_v58 = vmov 2.0  }
 0x104   : > { %1170 = vst.msk [vmem:[#allocation5] sm:$0xff] %vm1168_vm2, %v2036_v58 }
 0x105   : > { %v845_v53 = vpop.xlane.xlu1 %844  ;;  %v842_v26 = vpop.xlane.xlu0 %841 }
 0x106   : > { %994 = vxpose.xlu0.b32.cont [6/16] (narrow) %v830_v9, 8 }
 0x107   : > { %962 = vxpose.xlu1.b32.cont [6/16] (narrow) %v782_v3, 8  ;;  %v1087_v3 = vsub.s32 0, %v2740_v33 }
 0x109   : > { %v851_v30 = vpop.xlane.xlu1 %850  ;;  %v848_v22 = vpop.xlane.xlu0 %847 }
 0x10a   : > { %995 = vxpose.xlu0.b32.cont [7/16] (narrow) %v833_v56, 8 }
 0x10b   : > { %963 = vxpose.xlu1.b32.cont [7/16] (narrow) %v785_v29, 8 }
 0x10d   : > { %v863_v31 = vpop.xlane.xlu1 %862  ;;  %v854_v34 = vpop.xlane.xlu0 %853 }
 0x10e   : > { %996 = vxpose.xlu0.b32.cont [8/16] (narrow) %v836_v24, 8 }
 0x10f   : > { %964 = vxpose.xlu1.b32.cont [8/16] (narrow) %v788_v7, 8 }
 0x111   : > { %v911_v35 = vpop.xlane.xlu1 %910  ;;  %v866_v36 = vpop.xlane.xlu0 %865 }
 0x112   : > { %997 = vxpose.xlu0.b32.cont [9/16] (narrow) %v839_v57, 8 }
 0x113   : > { %965 = vxpose.xlu1.b32.cont [9/16] (narrow) %v791_v6, 8 }
 0x115   : > { %v914_v28 = vpop.xlane.xlu1 %913  ;;  %v869_v61 = vpop.xlane.xlu0 %868 }
 0x116   : > { %998 = vxpose.xlu0.b32.cont [10/16] (narrow) %v842_v26, 8 }
 0x117   : > { %966 = vxpose.xlu1.b32.cont [10/16] (narrow) %v794_v10, 8 }
 0x119   : > { %v917_v27 = vpop.xlane.xlu1 %916  ;;  %v872_v47 = vpop.xlane.xlu0 %871 }
 0x11a   : > { %999 = vxpose.xlu0.b32.cont [11/16] (narrow) %v845_v53, 8 }
 0x11b   : > { %967 = vxpose.xlu1.b32.cont [11/16] (narrow) %v797_v8, 8 }
 0x11d   : > { %v920_v37 = vpop.xlane.xlu1 %919  ;;  %v875_v14 = vpop.xlane.xlu0 %874 }
 0x11e   : > { %1000 = vxpose.xlu0.b32.cont [12/16] (narrow) %v848_v22, 8  ;;  %v1137_v22 = vld [vmem:[%s2884_s2] sm:$0xf] }
 0x11f   : > { %968 = vxpose.xlu1.b32.cont [12/16] (narrow) %v800_v13, 8 }
 0x121   : > { %v923_v25 = vpop.xlane.xlu1 %922  ;;  %v878_v5 = vpop.xlane.xlu0 %877 }
 0x122   : > { %1001 = vxpose.xlu0.b32.cont [13/16] (narrow) %v851_v30, 8  ;;  %v1145_v30 = vsub.s32 1, %v2740_v33 }
 0x123   : > { %969 = vxpose.xlu1.b32.cont [13/16] (narrow) %v803_v11, 8 }
 0x125   : > { %v926_v40 = vpop.xlane.xlu1 %925  ;;  %v881_v1 = vpop.xlane.xlu0 %880 }
 0x126   : > { %1002 = vxpose.xlu0.b32.cont [14/16] (narrow) %v854_v34, 8  ;;  %v1146_v34 = vrot.slane %v1137_v22, %v1145_v30 }
 0x127   : > { %970 = vxpose.xlu1.b32.cont [14/16] (narrow) %v806_v55, 8 }
 0x129   : > { %v929_v20 = vpop.xlane.xlu1 %928  ;;  %v884_v38 = vpop.xlane.xlu0 %883 }
 0x12b   : > { %971 = vxpose.xlu1.b32.cont [15/16] (narrow) %v809_v59, 8 }
 0x12d   : > { %v932_v62 = vpop.xlane.xlu1 %931  ;;  %v887_v50 = vpop.xlane.xlu0 %886 }
 0x12f   : > { %972 = vxpose.xlu1.b32.end [16/16] (narrow) %v812_v17, 8 }
 0x131   : > { %v935_v41 = vpop.xlane.xlu1 %934  ;;  %v890_v39 = vpop.xlane.xlu0 %889 }
 0x133   : > { %1053 = vxpose.xlu1.b32.start [1/16] (narrow) %v911_v35, 8 }
 0x135   : > { %v938_v42 = vpop.xlane.xlu1 %937  ;;  %v893_v43 = vpop.xlane.xlu0 %892 }
 0x137   : > { %1054 = vxpose.xlu1.b32.cont [2/16] (narrow) %v914_v28, 8 }
 0x139   : > { %v941_v44 = vpop.xlane.xlu1 %940  ;;  %v896_v52 = vpop.xlane.xlu0 %895 }
 0x13b   : > { %1055 = vxpose.xlu1.b32.cont [3/16] (narrow) %v917_v27, 8 }
 0x13d   : > { %v944_v4 = vpop.xlane.xlu1 %943  ;;  %v899_v45 = vpop.xlane.xlu0 %898 }
 0x13f   : > { %1056 = vxpose.xlu1.b32.cont [4/16] (narrow) %v920_v37, 8 }
 0x141   : > { %v902_v48 = vpop.xlane.xlu1 %901  ;;  %v857_v51 = vpop.xlane.xlu0 %856 }
 0x142   : > { %1003 = vxpose.xlu0.b32.cont [15/16] (narrow) %v857_v51, 8 }
 0x143   : > { %1057 = vxpose.xlu1.b32.cont [5/16] (narrow) %v923_v25, 8 }
 0x145   : > { %v860_v12 = vpop.xlane.xlu1 %859  ;;  %v947_v54 = vpop.xlane.xlu0 %946 }
 0x146   : > { %1004 = vxpose.xlu0.b32.end [16/16] (narrow) %v860_v12, 8 }
 0x147   : > { %1058 = vxpose.xlu1.b32.cont [6/16] (narrow) %v926_v40, 8 }
 0x149   : > { %v905_v63 = vpop.xlane.xlu0 %904  ;;  %v950_v32 = vpop.xlane.xlu1 %949 }
 0x14a   : > { %1021 = vxpose.xlu0.b32.start [1/16] (narrow) %v863_v31, 8  ;;  %v1142_v31 = vrot.slane %v1137_v22, %v1087_v3 }
 0x14b   : > { %1059 = vxpose.xlu1.b32.cont [7/16] (narrow) %v929_v20, 8 }
 0x14d   : > { %v908_v2 = vpop.xlane.xlu0 %907  ;;  %v953_v21 = vpop.xlane.xlu1 %952 }
 0x14e   : > { %1022 = vxpose.xlu0.b32.cont [2/16] (narrow) %v866_v36, 8 }
 0x14f   : > { %1060 = vxpose.xlu1.b32.cont [8/16] (narrow) %v932_v62, 8 }
 0x151   : > { %v956_v29 = vpop.xlane.xlu0 %955 }
 0x152   : > { %1023 = vxpose.xlu0.b32.cont [3/16] (narrow) %v869_v61, 8 }
 0x153   : > { %1061 = vxpose.xlu1.b32.cont [9/16] (narrow) %v935_v41, 8 }
 0x156   : > { %1024 = vxpose.xlu0.b32.cont [4/16] (narrow) %v872_v47, 8 }
 0x157   : > { %1062 = vxpose.xlu1.b32.cont [10/16] (narrow) %v938_v42, 8 }
 0x15a   : > { %1025 = vxpose.xlu0.b32.cont [5/16] (narrow) %v875_v14, 8 }
 0x15b   : > { %1063 = vxpose.xlu1.b32.cont [11/16] (narrow) %v941_v44, 8 }
 0x15e   : > { %1026 = vxpose.xlu0.b32.cont [6/16] (narrow) %v878_v5, 8 }
 0x15f   : > { %1064 = vxpose.xlu1.b32.cont [12/16] (narrow) %v944_v4, 8 }
 0x160   : > { %v621_v49 = vpop.f32.mrb[0].mxu0 }
 0x161   : > { %v623_v0 = vpop.f32.mrb[1].mxu0  ;;  %v1105_v8 = vmul.f32 2.0, %v621_v49 }
 0x162   : > { %1027 = vxpose.xlu0.b32.cont [7/16] (narrow) %v881_v1, 8  ;;  %v1106_v56 = vmul.f32 2.0, %v623_v0 }
 0x163   : > { %1065 = vxpose.xlu1.b32.cont [13/16] (narrow) %v947_v54, 8 }
 0x166   : > { %1028 = vxpose.xlu0.b32.cont [8/16] (narrow) %v884_v38, 8 }
 0x167   : > { %1066 = vxpose.xlu1.b32.cont [14/16] (narrow) %v950_v32, 8 }
 0x16a   : > { %1029 = vxpose.xlu0.b32.cont [9/16] (narrow) %v887_v50, 8 }
 0x16b   : > { %1067 = vxpose.xlu1.b32.cont [15/16] (narrow) %v953_v21, 8 }
 0x16e   : > { %1030 = vxpose.xlu0.b32.cont [10/16] (narrow) %v890_v39, 8 }
 0x16f   : > { %1068 = vxpose.xlu1.b32.end [16/16] (narrow) %v956_v29, 8 }
 0x170   : > { %v692_v16 = vpop.f32.mrb[0].mxu1 }
 0x171   : > { %v694_v17 = vpop.f32.mrb[1].mxu1  ;;  %v1107_v50 = vmul.f32 2.0, %v692_v16 }
 0x172   : > { %1031 = vxpose.xlu0.b32.cont [11/16] (narrow) %v893_v43, 8  ;;  %v1108_v14 = vmul.f32 2.0, %v694_v17 }
 0x173   : > { %v973_v6 = vpop.trf.xlu1 }
 0x174   : > { %v1088_v7 = vrot.slane %v973_v6, %v1087_v3 }
 0x176   : > { %v1101_v10 = vadd.f32 %v1088_v7, %v2737_v46  ;;  %1032 = vxpose.xlu0.b32.cont [12/16] (narrow) %v896_v52, 8 }
 0x178   : > { %v1109_v11 = vsub.f32 %v1101_v10, %v1105_v8 }
 0x17a   : > { %v1113_v13 = vmax.f32 %v1109_v11, 0.0  ;;  %1033 = vxpose.xlu0.b32.cont [13/16] (narrow) %v899_v45, 8  ;;  %v1149_v45 = vsub.s32 2, %v2740_v33 }
 0x17c   : > { %v1117_v59 = vmul.f32 -0.5, %v1113_v13  ;;  %v1150_v51 = vrot.slane %v1137_v22, %v1149_v45 }
 0x17e   : > { %v1121_v55 = vmul.f32 1.442695, %v1117_v59  ;;  %1034 = vxpose.xlu0.b32.cont [14/16] (narrow) %v902_v48, 8  ;;  %v1153_v48 = vsub.s32 3, %v2740_v33 }
 0x180   : > { %1896 = vpow2.f32 %v1121_v55 }
 0x182   : > { %1035 = vxpose.xlu0.b32.cont [15/16] (narrow) %v905_v63, 8  ;;  %v1154_v63 = vrot.slane %v1137_v22, %v1153_v48 }
 0x186   : > { %1036 = vxpose.xlu0.b32.end [16/16] (narrow) %v908_v2, 8 }
 0x18a   : > { %v1897_v18 = vpop.eup %1896  ;;  %v1005_v19 = vpop.trf.xlu0 }
 0x18b   : > { %v1129_v15 = vmul.f32 2.0, %v1897_v18  ;;  %v1092_v23 = vrot.slane %v1005_v19, %v1087_v3 }
 0x18d   : > { %1133 = vst [vmem:[#allocation2] sm:$0xff] %v1129_v15  ;;  %v1102_v9 = vadd.f32 %v1092_v23, %v2737_v46  ;;  %v1159_v28 = vmul.f32 %v1142_v31, %v1129_v15 }
 0x18f   : > { %v1110_v57 = vsub.f32 %v1102_v9, %v1106_v56 }
 0x191   : > { %v1114_v24 = vmax.f32 %v1110_v57, 0.0 }
 0x193   : > { %v1118_v53 = vmul.f32 -0.5, %v1114_v24 }
 0x195   : > { %v1123_v26 = vmul.f32 1.442695, %v1118_v53 }
 0x197   : > { %1898 = vpow2.f32 %v1123_v26 }
 0x1a1   : > { %v1899_v35 = vpop.eup %1898 }
 0x1a2   : > { %v1130_v36 = vmul.f32 2.0, %v1899_v35 }
 0x1a4   : > { %1134 = vst [vmem:[#allocation2 + $0x8] sm:$0xff] %v1130_v36  ;;  %v1160_v61 = vmul.f32 %v1146_v34, %v1130_v36 }
 0x1a6   : > { %v1163_v27 = vadd.f32 %v1160_v61, %v1159_v28 }
 0x1b3   : > { %v1069_v47 = vpop.trf.xlu1 }
 0x1b4   : > { %v1100_v37 = vrot.slane %v1069_v47, %v1087_v3 }
 0x1b6   : > { %v1104_v25 = vadd.f32 %v1100_v37, %v2737_v46 }
 0x1b8   : > { %v1112_v5 = vsub.f32 %v1104_v25, %v1108_v14 }
 0x1ba   : > { %v1116_v40 = vmax.f32 %v1112_v5, 0.0 }
 0x1bc   : > { %v1120_v1 = vmul.f32 -0.5, %v1116_v40 }
 0x1be   : > { %v1127_v20 = vmul.f32 1.442695, %v1120_v1 }
 0x1c0   : > { %1900 = vpow2.f32 %v1127_v20 }
 0x1ca   : > { %v1901_v38 = vpop.eup %1900  ;;  %v1037_v62 = vpop.trf.xlu0 }
 0x1cb   : > { %v1096_v41 = vrot.slane %v1037_v62, %v1087_v3  ;;  %v1132_v39 = vmul.f32 2.0, %v1901_v38 }
 0x1cd   : > { %v1103_v42 = vadd.f32 %v1096_v41, %v2737_v46  ;;  %1136 = vst [vmem:[#allocation2 + $0x18] sm:$0xff] %v1132_v39  ;;  %v1162_v49 = vmul.f32 %v1154_v63, %v1132_v39 }
 0x1cf   : > { %v1111_v43 = vsub.f32 %v1103_v42, %v1107_v50 }
 0x1d1   : > { %v1115_v44 = vmax.f32 %v1111_v43, 0.0 }
 0x1d3   : > { %v1119_v52 = vmul.f32 -0.5, %v1115_v44 }
 0x1d5   : > { %v1125_v4 = vmul.f32 1.442695, %v1119_v52 }
 0x1d7   : > { %1902 = vpow2.f32 %v1125_v4 }
 0x1e1   : > { %v1903_v12 = vpop.eup %1902 }
 0x1e2   : > { %v1131_v54 = vmul.f32 2.0, %v1903_v12 }
 0x1e4   : > { %1135 = vst [vmem:[#allocation2 + $0x10] sm:$0xff] %v1131_v54  ;;  %v1161_v32 = vmul.f32 %v1150_v51, %v1131_v54 }
 0x1e6   : > { %v1164_v0 = vadd.f32 %v1163_v27, %v1161_v32 }
 0x1e8   : > { %v1165_v2 = vadd.f32 %v1164_v0, %v1162_v49 }
 0x1ea   : > { %1166 = vadd.xlane.f32.xlu0 %v1165_v2 }
 0x277   : > { %v1167_v46 = vpop.xlane.xlu0 %1166 }
 0x278   : > { %1169 = vst.msk [vmem:[#allocation4] sm:$0xff] %vm1168_vm2, %v1167_v46 }
 0x279 PF: > { %p1573_p7 = scmp.ne.s32.totalorder %s2014_s18, 0 }
 0x27a   : > { %v2037_v60 = vmov (!%p1573_p7), 0.0  }
 0x27b   : > { %1173 = sbr.rel (%p1573_p7) target bundleno = 642 (0x282), region = 48  ;;  %1174 = vst [vmem:[#allocation3] sm:$0xff] (!%p1573_p7), %v2037_v60  ;;  %1175 = vst [vmem:[#allocation3 + $0x8] sm:$0xff] (!%p1573_p7), %v2037_v60 }
 0x282 PF: > { %v1186_v21 = vld [vmem:[%s2182_s7 + $0x8] sm:$0xff]  ;;  %v1188_v58 = vld [vmem:[%s2182_s7 + $0x18] sm:$0xff]  ;;  %v1185_v33 = vld [vmem:[%s2182_s7] sm:$0xff]  ;;  %s1574_s8 = sshll.u32 %s2014_s18, 8  ;;  %p1324_p8 = scmp.eq.s32.totalorder %s2014_s18, 1 }
 0x283   : > { %v1748_v29 = vpack.c.bf16 %v1188_v58, %v1186_v21  ;;  %v1187_v3 = vld [vmem:[%s2182_s7 + $0x10] sm:$0xff]  ;;  %v1190_v6 = vld [vmem:[%s2182_s7 + $0x28] sm:$0xff]  ;;  %v1192_v7 = vld [vmem:[%s2182_s7 + $0x38] sm:$0xff]  ;;  %s1179_s6 = sshra.s32 %s1574_s8, 7  ;;  %p1576_p9 = scmp.ne.s32.totalorder %s2014_s18, 1 }
 0x284   : > { %v1750_v8 = vpack.c.bf16 %v1187_v3, %v1185_v33  ;;  %v1752_v10 = vpack.c.bf16 %v1192_v7, %v1190_v6  ;;  %v1189_v11 = vld [vmem:[%s2182_s7 + $0x20] sm:$0xff]  ;;  %v1191_v13 = vld [vmem:[%s2182_s7 + $0x30] sm:$0xff]  ;;  %v1194_v59 = vld [vmem:[%s2182_s7 + $0x48] sm:$0xff]  ;;  %s1575_s29 = sshll.u32 %s1179_s6, 3  ;;  %vm1344_vm3 = vcmask (!%p1576_p9), 7168  }
 0x285   : > { %1749 = vmatprep.subr.bf16.mxu0 %v1748_v29  ;;  %v1196_v55 = vld [vmem:[%s2182_s7 + $0x58] sm:$0xff]  ;;  %v1754_v16 = vpack.c.bf16 %v1191_v13, %v1189_v11  ;;  %v1193_v18 = vld [vmem:[%s2182_s7 + $0x40] sm:$0xff]  ;;  %v1195_v19 = vld [vmem:[%s2182_s7 + $0x50] sm:$0xff]  ;;  %s2784_s10 = scalar_lea.vmem [#allocation2], %s1575_s29 }
 0x286   : > { %1751 = vmatpush1.bf16.msra.mxu0 %v1750_v8  ;;  %v1756_v17 = vpack.c.bf16 %v1196_v55, %v1194_v59  ;;  %v1198_v15 = vld [vmem:[%s2182_s7 + $0x68] sm:$0xff]  ;;  %v1200_v23 = vld [vmem:[%s2182_s7 + $0x78] sm:$0xff]  ;;  %v1758_v56 = vpack.c.bf16 %v1195_v19, %v1193_v18  ;;  %v1197_v57 = vld [vmem:[%s2182_s7 + $0x60] sm:$0xff] }
 0x287   : > { %1753 = vmatprep.subr.bf16.mxu0 %v1752_v10  ;;  %v1760_v9 = vpack.c.bf16 %v1200_v23, %v1198_v15  ;;  %v1199_v24 = vld [vmem:[%s2182_s7 + $0x70] sm:$0xff]  ;;  %v1202_v53 = vld [vmem:[%s2182_s7 + $0x88] sm:$0xff]  ;;  %v1204_v26 = vld [vmem:[%s2182_s7 + $0x98] sm:$0xff] }
 0x288   : > { %v1762_v30 = vpack.c.bf16 %v1199_v24, %v1197_v57  ;;  %v1764_v22 = vpack.c.bf16 %v1204_v26, %v1202_v53  ;;  %v1201_v31 = vld [vmem:[%s2182_s7 + $0x80] sm:$0xff]  ;;  %v1203_v34 = vld [vmem:[%s2182_s7 + $0x90] sm:$0xff]  ;;  %v1206_v35 = vld [vmem:[%s2182_s7 + $0xa8] sm:$0xff] }
 0x289   : > { %v1208_v36 = vld [vmem:[%s2182_s7 + $0xb8] sm:$0xff]  ;;  %v1766_v28 = vpack.c.bf16 %v1203_v34, %v1201_v31  ;;  %v1205_v27 = vld [vmem:[%s2182_s7 + $0xa0] sm:$0xff]  ;;  %v1207_v47 = vld [vmem:[%s2182_s7 + $0xb0] sm:$0xff] }
 0x28a   : > { %1755 = vmatpush1.bf16.msra.mxu0 %v1754_v16  ;;  %v1768_v61 = vpack.c.bf16 %v1208_v36, %v1206_v35  ;;  %v1210_v37 = vld [vmem:[%s2182_s7 + $0xc8] sm:$0xff]  ;;  %v1212_v14 = vld [vmem:[%s2182_s7 + $0xd8] sm:$0xff]  ;;  %v1770_v25 = vpack.c.bf16 %v1207_v47, %v1205_v27  ;;  %v1209_v40 = vld [vmem:[%s2182_s7 + $0xc0] sm:$0xff] }
 0x28b   : > { %1757 = vmatprep.subr.bf16.mxu0 %v1756_v17  ;;  %v1772_v5 = vpack.c.bf16 %v1212_v14, %v1210_v37  ;;  %v1211_v1 = vld [vmem:[%s2182_s7 + $0xd0] sm:$0xff]  ;;  %v1184_v20 = vld [vmem:[%s2784_s10 + $0x8] sm:$0xff]  ;;  %v1216_v62 = vld [vmem:[%s2182_s7 + $0xf8] sm:$0xff] }
 0x28c   : > { %v1214_v38 = vld [vmem:[%s2182_s7 + $0xe8] sm:$0xff]  ;;  %1313 = vmatprep.mubr.f32.mxu0 %v1184_v20  ;;  %v1774_v50 = vpack.c.bf16 %v1211_v1, %v1209_v40  ;;  %v1213_v39 = vld [vmem:[%s2182_s7 + $0xe0] sm:$0xff]  ;;  %v1215_v42 = vld [vmem:[%s2182_s7 + $0xf0] sm:$0xff] }
 0x28d   : > { %v1776_v41 = vpack.c.bf16 %v1216_v62, %v1214_v38  ;;  %v1218_v43 = vld [vmem:[%s2182_s7 + $0x108] sm:$0xff]  ;;  %v1220_v44 = vld [vmem:[%s2182_s7 + $0x118] sm:$0xff]  ;;  %v1778_v52 = vpack.c.bf16 %v1215_v42, %v1213_v39  ;;  %v1217_v45 = vld [vmem:[%s2182_s7 + $0x100] sm:$0xff] }
 0x28e   : > { %1759 = vmatpush1.bf16.msra.mxu0 %v1758_v56  ;;  %v1780_v4 = vpack.c.bf16 %v1220_v44, %v1218_v43  ;;  %v1219_v48 = vld [vmem:[%s2182_s7 + $0x110] sm:$0xff]  ;;  %v1222_v51 = vld [vmem:[%s2182_s7 + $0x128] sm:$0xff]  ;;  %v1224_v12 = vld [vmem:[%s2182_s7 + $0x138] sm:$0xff] }
 0x28f   : > { %1761 = vmatprep.subr.bf16.mxu0 %v1760_v9  ;;  %v1782_v54 = vpack.c.bf16 %v1219_v48, %v1217_v45  ;;  %v1784_v63 = vpack.c.bf16 %v1224_v12, %v1222_v51  ;;  %v1221_v32 = vld [vmem:[%s2182_s7 + $0x120] sm:$0xff]  ;;  %v1223_v49 = vld [vmem:[%s2182_s7 + $0x130] sm:$0xff]  ;;  %v1226_v0 = vld [vmem:[%s2182_s7 + $0x148] sm:$0xff] }
 0x290   : > { %v1228_v2 = vld [vmem:[%s2182_s7 + $0x158] sm:$0xff]  ;;  %v1786_v46 = vpack.c.bf16 %v1223_v49, %v1221_v32  ;;  %v1225_v21 = vld [vmem:[%s2182_s7 + $0x140] sm:$0xff]  ;;  %v1227_v58 = vld [vmem:[%s2182_s7 + $0x150] sm:$0xff] }
 0x291   : > { %v1788_v60 = vpack.c.bf16 %v1228_v2, %v1226_v0  ;;  %v1230_v33 = vld [vmem:[%s2182_s7 + $0x168] sm:$0xff]  ;;  %v1232_v29 = vld [vmem:[%s2182_s7 + $0x178] sm:$0xff]  ;;  %v1790_v3 = vpack.c.bf16 %v1227_v58, %v1225_v21  ;;  %v1229_v7 = vld [vmem:[%s2182_s7 + $0x160] sm:$0xff] }
 0x292   : > { %1763 = vmatpush1.bf16.msra.mxu0 %v1762_v30  ;;  %v1792_v6 = vpack.c.bf16 %v1232_v29, %v1230_v33  ;;  %v1231_v8 = vld [vmem:[%s2182_s7 + $0x170] sm:$0xff]  ;;  %v1234_v10 = vld [vmem:[%s2182_s7 + $0x188] sm:$0xff]  ;;  %v1236_v11 = vld [vmem:[%s2182_s7 + $0x198] sm:$0xff] }
 0x293   : > { %1765 = vmatprep.subr.bf16.mxu0 %v1764_v22  ;;  %v1794_v13 = vpack.c.bf16 %v1231_v8, %v1229_v7  ;;  %v1796_v59 = vpack.c.bf16 %v1236_v11, %v1234_v10  ;;  %v1233_v55 = vld [vmem:[%s2182_s7 + $0x180] sm:$0xff]  ;;  %v1235_v16 = vld [vmem:[%s2182_s7 + $0x190] sm:$0xff]  ;;  %v1238_v17 = vld [vmem:[%s2182_s7 + $0x1a8] sm:$0xff] }
 0x294   : > { %v1240_v18 = vld [vmem:[%s2182_s7 + $0x1b8] sm:$0xff]  ;;  %v1798_v19 = vpack.c.bf16 %v1235_v16, %v1233_v55  ;;  %v1237_v23 = vld [vmem:[%s2182_s7 + $0x1a0] sm:$0xff]  ;;  %v1239_v56 = vld [vmem:[%s2182_s7 + $0x1b0] sm:$0xff] }
 0x295   : > { %v1800_v15 = vpack.c.bf16 %v1240_v18, %v1238_v17  ;;  %v1242_v9 = vld [vmem:[%s2182_s7 + $0x1c8] sm:$0xff]  ;;  %v1244_v57 = vld [vmem:[%s2182_s7 + $0x1d8] sm:$0xff]  ;;  %v1802_v24 = vpack.c.bf16 %v1239_v56, %v1237_v23  ;;  %v1241_v26 = vld [vmem:[%s2182_s7 + $0x1c0] sm:$0xff] }
 0x296   : > { %1767 = vmatpush1.bf16.msra.mxu0 %v1766_v28  ;;  %v1804_v53 = vpack.c.bf16 %v1244_v57, %v1242_v9  ;;  %v1243_v30 = vld [vmem:[%s2182_s7 + $0x1d0] sm:$0xff]  ;;  %v1246_v22 = vld [vmem:[%s2182_s7 + $0x1e8] sm:$0xff]  ;;  %v1248_v31 = vld [vmem:[%s2182_s7 + $0x1f8] sm:$0xff] }
 0x297   : > { %1769 = vmatprep.subr.bf16.mxu0 %v1768_v61  ;;  %v1806_v34 = vpack.c.bf16 %v1243_v30, %v1241_v26  ;;  %v1808_v35 = vpack.c.bf16 %v1248_v31, %v1246_v22  ;;  %v1245_v36 = vld [vmem:[%s2182_s7 + $0x1e0] sm:$0xff]  ;;  %v1247_v28 = vld [vmem:[%s2182_s7 + $0x1f0] sm:$0xff]  ;;  %v1178_v37 = vld [vmem:[#allocation3 + $0x8] sm:$0xff]  ;;  %s1577_s7 = sshll.u32 (!%p1576_p9), %s2018_s19, 8 }
 0x298   : > { %v1810_v61 = vpack.c.bf16 %v1247_v28, %v1245_v36  ;;  %v1183_v27 = vld [vmem:[%s2784_s10] sm:$0xff]  ;;  %s1332_s11 = sshra.s32 (!%p1576_p9), %s1577_s7, 7  ;;  %v1329_v42 = vld [vmem:[#allocation5] sm:$0xff] (!%p1576_p9) }
 0x299   : > { %v1177_v47 = vld [vmem:[#allocation3] sm:$0xff]  ;;  %s1578_s12 = sshll.u32 (!%p1576_p9), %s1332_s11, 3 }
 0x29a   : > { %1771 = vmatpush1.bf16.msra.mxu0 %v1770_v25  ;;  %s1335_s14 = scalar_lea.vmem (!%p1576_p9), [#allocation2], %s1578_s12 }
 0x29b   : > { %1773 = vmatprep.subr.bf16.mxu0 %v1772_v5  ;;  %v1336_v38 = vld [vmem:[%s1335_s14] sm:$0xff] (!%p1576_p9)  ;;  %v1337_v62 = vld [vmem:[%s1335_s14 + $0x8] sm:$0xff] (!%p1576_p9) }
 0x29e   : > { %1775 = vmatpush1.bf16.msra.mxu0 %v1774_v50 }
 0x29f   : > { %1777 = vmatprep.subr.bf16.mxu0 %v1776_v41 }
 0x2a2   : > { %1779 = vmatpush1.bf16.msra.mxu0 %v1778_v52 }
 0x2a3   : > { %1781 = vmatprep.subr.bf16.mxu0 %v1780_v4 }
 0x2a6   : > { %1783 = vmatpush1.bf16.msra.mxu0 %v1782_v54 }
 0x2a7   : > { %1785 = vmatprep.subr.bf16.mxu0 %v1784_v63 }
 0x2aa   : > { %1787 = vmatpush1.bf16.msra.mxu0 %v1786_v46 }
 0x2ab   : > { %1789 = vmatprep.subr.bf16.mxu0 %v1788_v60 }
 0x2ae   : > { %1791 = vmatpush1.bf16.msra.mxu0 %v1790_v3 }
 0x2af   : > { %1793 = vmatprep.subr.bf16.mxu0 %v1792_v6 }
 0x2b2   : > { %1795 = vmatpush1.bf16.msra.mxu0 %v1794_v13 }
 0x2b3   : > { %1797 = vmatprep.subr.bf16.mxu0 %v1796_v59 }
 0x2b6   : > { %1799 = vmatpush1.bf16.msra.mxu0 %v1798_v19 }
 0x2b7   : > { %1801 = vmatprep.subr.bf16.mxu0 %v1800_v15 }
 0x2ba   : > { %1803 = vmatpush1.bf16.msra.mxu0 %v1802_v24 }
 0x2bb   : > { %1805 = vmatprep.subr.bf16.mxu0 %v1804_v53 }
 0x2be   : > { %1807 = vmatpush1.bf16.msra.mxu0 %v1806_v34 }
 0x2bf   : > { %1809 = vmatprep.subr.bf16.mxu0 %v1808_v35 }
 0x2c2   : > { %1811 = vmatpush1.bf16.msra.mxu0 %v1810_v61 }
 0x2c5   : > { %1314 = vmatmul.mubr.f32.vlgmr.msra.gmra.mrb[0].mxu0 %v1183_v27 }
 0x396   : > { %1327 = sbr.rel (%p1576_p9) target bundleno = 1081 (0x439), region = 52 }
 0x398   : > { %v1315_v14 = vpop.f32.mrb[0].mxu0 }
 0x399   : > { %v1320_v25 = vadd.f32 %v1315_v14, %v1177_v47  ;;  %v1317_v5 = vpop.f32.mrb[1].mxu0 }
 0x39a   : > { %v1321_v40 = vadd.f32 %v1317_v5, %v1178_v37 }
 0x39b   : > { %1322 = vst [vmem:[#allocation3] sm:$0xff] %v1320_v25 }
 0x39c   : > { %1323 = vst [vmem:[#allocation3 + $0x8] sm:$0xff] %v1321_v40 }
 0x3a2   : > { %v1330_v1 = vld [vmem:[#allocation3] sm:$0xff] }
 0x3a3   : > { %v1331_v20 = vld [vmem:[#allocation3 + $0x8] sm:$0xff]  ;;  %v1338_v50 = vmul.f32 %v1336_v38, %v1330_v1 }
 0x3a4   : > { %v1339_v41 = vmul.f32 %v1337_v62, %v1331_v20 }
 0x3a6   : > { %v1340_v39 = vadd.f32 %v1339_v41, %v1338_v50 }
 0x3a8   : > { %1341 = vadd.xlane.f32.xlu0 %v1340_v39 }
 0x435   : > { %v1342_v43 = vpop.xlane.xlu0 %1341 }
 0x436   : > { %v1343_v44 = vsub.f32 %v1329_v42, %v1342_v43 }
 0x438   : > { %1345 = vst.msk [vmem:[#allocation5] sm:$0xff] %vm1344_vm3, %v1343_v44 }
 0x439 PF: > { %p1346_p11 = scmp.eq.s32.totalorder %s2018_s19, 1 }
 0x43b   : > { %p1347_p13 = pnand %p1346_p11, %p1324_p8 }
 0x43c   : > { %v1351_v52 = vld [vmem:[#allocation4] sm:$0xff] (!%p1347_p13)  ;;  %vm1384_vm4 = vcmask (!%p1347_p13), 57344  }
 0x43d   : > { %1350 = sbr.rel (%p1347_p13) target bundleno = 1220 (0x4c4), region = 56  ;;  %1352 = vxpose.xlu0.b32.start.end [1/1] (short) (narrow) (!%p1347_p13), %v1351_v52, 8 }
 0x43f   : > { %v1386_v4 = vld [vmem:[#allocation5] sm:$0xff] (!%p1347_p13) }
 0x440   : > { %v1387_v45 = vmax.f32 (!%p1347_p13), %v1386_v4, 0.0 }
 0x442   : > { %1388 = vxpose.xlu0.b32.start.end [1/1] (short) (narrow) (!%p1347_p13), %v1387_v45, 8 }
 0x4bd   : > { %v1368_v48 = vpop.trf.xlu0 }
 0x4be   : > { %1385 = vst.msk [vmem:[#allocation9] sm:$0x1] %vm1384_vm4, %v1368_v48 }
 0x4c2   : > { %v1404_v51 = vpop.trf.xlu0 }
 0x4c3   : > { %1420 = vst.msk [vmem:[#allocation9 + $0x1] sm:$0x1] %vm1384_vm4, %v1404_v51 }
 0x4c4 PF: > { %s2895_s15 = sadd.s32 4294967295, %s2030_s22   ;;  %s2038_s18 = smov [#allocation9]  }
 0x4c5   : > { %p2832_p1 = scmp.eq.s32.totalorder %s2895_s15, 3  ;;  %s1428_s19 = sshll.u32 %s2038_s18, 4  ;;  %s1429_s19 = int_to_ptr.vmem [resolvable:$true] %s1428_s19 }
 0x4c6   : > { %s1934_s23 = scalar_lea.vmem %s1429_s19, 32  ;;  %p1941_p0 = scmp.lt.s32.totalorder %s1429_s19, %s1429_s19 }
 0x4c7   : > { %p1935_p2 = scmp.ne.s32.totalorder %s1429_s19, %s1934_s23  ;;  %p1942_p4 = scmp.lt.s32.totalorder %s1934_s23, %s1934_s23 }
 0x4c9   : > { %p1936_p3 = pnand %p1935_p2, %p2832_p1  ;;  %p1943_p5 = por %p1942_p4, %p1941_p0 }
 0x4cb   : > { %p1937_p12 = pneg %p1936_p3 }
 0x4cd   : > { %p1944_p10 = pnand %p1943_p5, %p1937_p12 }
 0x4cf   : > { %1947 = shalt.err (!%p1944_p10)
}
 0x4d0   : > { %s1948_s24 = scalar_lea.hbm %s2886_s4, 32 }
 0x4d1   : > { %p1949_p6 = scmp.ne.s32.totalorder %s2886_s4, %s1948_s24  ;;  %p1954_p9 = scmp.lt.u32.totalorder %s1948_s24, %s2886_s4 }
 0x4d3   : > { %p1950_p7 = pnand %p1949_p6, %p2832_p1 }
 0x4d5   : > { %p1951_p8 = pneg %p1950_p7 }
 0x4d7   : > { %p1956_p11 = pnand %p1954_p9, %p1951_p8 }
 0x4d9   : > { %1959 = shalt.err (!%p1956_p11)
}
 0x4da   : > { %1815 = dma.vmem_to_hbm [thread:$0]  (%p2832_p1), %s1429_s19, 32, %s2886_s4, [#allocation8]  }
 0x4db   : > { %1997 = dma.done.wait (%p2832_p1), [#allocation8], 32  }
 0x4dc   : > { %1999 = vsyncadd (%p2832_p1), [#allocation8], 4294967264 }
 0x4dd PF: > { %s18_s22 = sadd.s32 1, %s2030_s22   ;;  %s2897_s10 = sld [smem:[#allocation12_spill]] }
 0x4de   : > { %p15_p13 = scmp.ge.s32.totalorder %s18_s22, 6   ;;  %s2898_s15 = smov %s2006_s16 }
 0x4df   : > { %s2899_s16 = smov %s2010_s17  ;;  %s2900_s17 = smov %s2133_s9 }
 0x4e0   : > { %s2901_s18 = smov %s2022_s20  ;;  %s2902_s19 = smov %s2026_s21 }
 0x4e1   : > { %s2904_s21 = smov %s2910_s25  ;;  %17 = sbr.rel (!%p15_p13) target bundleno = 6 (0x6), region = 91 }
 0x4e3   : > { %s2903_s20 = smov %s2897_s10 }
 0x4e8   :  { %1441 = vsyncpa [#allocation7], 1 }
 0x4e9   :  { %1443 = vsyncpa [#allocation7 + $0x1], 1 }
 0x4ea   :  { %1444 = vsyncpa [#allocation8], 1 }
 0x4eb   :  { %1446 = vsyncpa [#allocation8 + $0x1], 1 }

</bundles_post_ra>
